<compile_context>
chip_gen: v5e
topology: v5e:2x2
jax: 0.10.0
libtpu: 0.0.40
codegen_flags: <defaults>
</compile_context>

<pallas_src>
import functools

import jax
import jax.numpy as jnp
from jax.experimental import pallas as pl
from jax.experimental.pallas import tpu as pltpu

LANE = 128
SUBLANE = 8


def _round_up(x, m):
    return -(-x // m) * m


def _tpu_generation():
    """Best-effort TPU generation (4/5/6/7); 0 if unknown."""
    try:
        kind = jax.devices()[0].device_kind.lower()
    except Exception:
        return 0
    for g in (7, 6, 5, 4):
        if f"v{g}" in kind or f"tpu{g}" in kind:
            return g
    return 0


# ----------------------------- Pallas kernel --------------------------------
def _nonlocal_kernel(use_bf16_exp, x_ref, thw_ref, thb_ref, phi_ref, g_ref,
                     w_ref, b_ref, mask_ref, o_ref):
    x_bf = x_ref[0]                                   # (tN, Cp) bf16 (streamed)

    # Fused theta 1x1 projection: (tN, dIp)   (bf16 MXU, f32 accumulate)
    theta = jnp.dot(x_bf, thw_ref[...],
                    preferred_element_type=jnp.float32) + thb_ref[...]

    # f = theta @ phi^T -> (tN, Npp); additive (-1e30) bias row masks Np padding.
    f = jnp.dot(theta.astype(jnp.bfloat16), phi_ref[0],
                preferred_element_type=jnp.float32) + mask_ref[...]

    # Softmax with deferred normalization (divide after the PV matmul).
    m = jnp.max(f, axis=-1, keepdims=True)
    e = f - m
    if use_bf16_exp:                      # v6e/v7x: bf16 EUP path (~2x exp thpt)
        p_bf = jnp.exp(e.astype(jnp.bfloat16))
        denom = jnp.sum(p_bf.astype(jnp.float32), axis=-1, keepdims=True)
    else:                                 # v5e: EUP has no bf16 path
        p = jnp.exp(e)
        denom = jnp.sum(p, axis=-1, keepdims=True)
        p_bf = p.astype(jnp.bfloat16)

    y = jnp.dot(p_bf, g_ref[0], preferred_element_type=jnp.float32)   # (tN, dIp)
    y = y * pl.reciprocal(denom, approx=True)

    # z = BN(W(y)) + x  (1x1 W conv + eval-mode BN fused into affine w_eff/b_eff)
    out = (jnp.dot(y.astype(jnp.bfloat16), w_ref[...],
                   preferred_element_type=jnp.float32)
           + b_ref[...] + x_bf.astype(jnp.float32))
    o_ref[0] = out.astype(o_ref.dtype)


def nonlocal_attention(x_pad, theta_wT, theta_b, phi_xt, g_x, w_eff, b_eff,
                       mask_row, tile_n, vmem_limit, use_bf16_exp):
    B, N_pad, Cp = x_pad.shape
    dIp, Npp = phi_xt.shape[1], phi_xt.shape[2]
    assert N_pad % tile_n == 0
    n_tiles = N_pad // tile_n

    flops = B * N_pad * (2 * Cp * dIp        # theta projection
                         + 2 * Npp * dIp     # scores
                         + 2 * Npp * dIp     # PV matmul
                         + 2 * dIp * Cp)     # fused W conv
    bytes_accessed = (x_pad.size * 2 + B * N_pad * Cp * 4
                      + theta_wT.size * 2 + theta_b.size * 4
                      + phi_xt.size * 2 + g_x.size * 2
                      + w_eff.size * 2 + b_eff.size * 4 + mask_row.size * 4)
    cost = pl.CostEstimate(flops=flops,
                           transcendentals=B * N_pad * Npp,
                           bytes_accessed=bytes_accessed)

    # Grid-resident operands: constant index across the n axis -> single buffer
    # (no point paying double VMEM for data that never changes within a batch).
    resident = functools.partial(pl.BlockSpec, pipeline_mode=pl.Buffered(1))

    return pl.pallas_call(
        functools.partial(_nonlocal_kernel, use_bf16_exp),
        out_shape=jax.ShapeDtypeStruct((B, N_pad, Cp), jnp.float32),
        grid=(B, n_tiles),
        in_specs=[
            # streamed tiles (default double-buffering)
            pl.BlockSpec((1, tile_n, Cp), lambda b, n: (b, n, 0)),   # x (bf16 residual)
            # resident operands (single-buffered)
            resident((Cp, dIp), lambda b, n: (0, 0)),                # theta_w^T
            resident((1, dIp), lambda b, n: (0, 0)),                 # theta_b
            resident((1, dIp, Npp), lambda b, n: (b, 0, 0)),         # phi^T (per batch)
            resident((1, Npp, dIp), lambda b, n: (b, 0, 0)),         # g     (per batch)
            resident((dIp, Cp), lambda b, n: (0, 0)),                # fused W*BN weight
            resident((1, Cp), lambda b, n: (0, 0)),                  # fused W*BN bias
            resident((1, Npp), lambda b, n: (0, 0)),                 # Np-pad mask bias
        ],
        out_specs=pl.BlockSpec((1, tile_n, Cp), lambda b, n: (b, n, 0)),
        compiler_params=pltpu.CompilerParams(
            dimension_semantics=("parallel", "parallel"),
            vmem_limit_bytes=vmem_limit),
        cost_estimate=cost,
    )(x_pad, theta_wT, theta_b, phi_xt, g_x, w_eff, b_eff, mask_row)


# ------------------------------- parameters ---------------------------------
def init_params(key, in_channels):
    inter = in_channels // 2
    if inter == 0:
        inter = 1
    ks = jax.random.split(key, 10)

    def w(k, shape):
        return (0.1 * jax.random.normal(k, shape)).astype(jnp.float32)

    return dict(
        g_w=w(ks[0], (inter, in_channels)), g_b=w(ks[1], (inter,)),
        theta_w=w(ks[2], (inter, in_channels)), theta_b=w(ks[3], (inter,)),
        phi_w=w(ks[4], (inter, in_channels)), phi_b=w(ks[5], (inter,)),
        W_w=w(ks[6], (in_channels, inter)), W_b=w(ks[7], (in_channels,)),
        # NOTE: torch __init__ zero-inits BN gamma/beta (making z == x exactly);
        # small non-zero values are used here so the full compute path is exercised.
        bn_gamma=w(ks[8], (in_channels,)), bn_beta=w(ks[9], (in_channels,)),
        bn_mean=jnp.zeros((in_channels,), jnp.float32),
        bn_var=jnp.ones((in_channels,), jnp.float32),
    )


# ------------------------------- glue / wrapper ------------------------------
def nonlocal_block_forward(params, x, *, tile_n=None):
    B, C, H, W = x.shape
    dI = params["theta_w"].shape[0]
    N = H * W
    Hp, Wp = H // 2, W // 2
    Np = Hp * Wp

    x_flat = jnp.transpose(x, (0, 2, 3, 1)).reshape(B, N, C)   # (B, N, C)
    x_bf = x_flat.astype(jnp.bfloat16)

    # phi / g 1x1 projections with bf16 operands + f32 accumulation (matches the
    # kernel's precision), then MaxPool2d(2,2); cast to bf16 for the kernel.
    def conv1x1(wgt, b):
        return jnp.einsum("bnc,dc->bnd", x_bf, wgt.astype(jnp.bfloat16),
                          preferred_element_type=jnp.float32) + b

    def pool2x2(v):
        return jnp.max(v.reshape(B, Hp, 2, Wp, 2, dI), axis=(2, 4)).reshape(B, Np, dI)

    phi_x = pool2x2(conv1x1(params["phi_w"], params["phi_b"]))   # (B, Np, dI)
    g_x = pool2x2(conv1x1(params["g_w"], params["g_b"]))         # (B, Np, dI)

    # Fuse 1x1 conv W with BatchNorm (eval-mode running stats) into an affine map.
    # TODO(synk): torch default-train BN would use batch stats of W_y; eval-mode
    # running stats are used here.
    eps = 1e-5
    s = params["bn_gamma"] * jax.lax.rsqrt(params["bn_var"] + eps)
    w_eff = params["W_w"].T * s[None, :]                         # (dI, C)
    b_eff = (params["W_b"] - params["bn_mean"]) * s + params["bn_beta"]

    # Lane-dense padding targets.
    Cp = _round_up(C, LANE)
    dIp = _round_up(dI, LANE)
    Npp = _round_up(Np, LANE)

    # Generation-aware tile size / VMEM budget.
    gen = _tpu_generation()
    use_bf16_exp = gen >= 6                      # v5e EUP has no bf16 path
    if gen in (4, 5, 6):                         # 128 MiB physical VMEM parts
        tile_cap, vmem_limit = 512, 64 * 1024 * 1024
    else:                                        # v7x (64 MiB physical) / unknown
        tile_cap, vmem_limit = 256, 48 * 1024 * 1024
    if tile_n is not None:
        tile_cap = tile_n

    # Shrink the tile until the VMEM working set fits comfortably in the budget.
    resident_bytes = (2 * dIp * Npp * 2              # phi^T + g (bf16, single-buffered)
                      + 2 * Cp * dIp * 2             # theta_w^T + w_eff (bf16)
                      + (2 * dIp + 2 * Cp + Npp) * 4)   # biases + mask row (f32)

    def _need(tn):
        stream = 2 * tn * Cp * (2 + 4)               # x (bf16) + out (f32), double-buffered
        scratch = 2 * tn * Npp * 4 + 2 * tn * (dIp + Cp) * 4   # score slab + intermediates
        return resident_bytes + stream + scratch

    while tile_cap > 64 and _need(tile_cap) > 0.7 * vmem_limit:
        tile_cap //= 2
    # TODO(synk): for very large feature maps where phi/g residency alone exceeds
    # the VMEM budget, switch to a flash-style online-softmax loop over Np chunks.

    # v7x megacore: keep >= 2 grid steps on the 'parallel' axes when B == 1.
    if B == 1:
        while tile_cap > 64 and pl.cdiv(N, tile_cap) < 2:
            tile_cap //= 2

    tN = min(tile_cap, _round_up(N, SUBLANE))
    N_pad = _round_up(N, tN)

    def pad_to(a, shape):
        return jnp.pad(a, [(0, t - sz) for sz, t in zip(a.shape, shape)])

    x_pad = pad_to(x_bf, (B, N_pad, Cp))                                    # bf16 stream
    theta_wT = pad_to(params["theta_w"].T, (Cp, dIp)).astype(jnp.bfloat16)
    theta_b = pad_to(params["theta_b"].reshape(1, dI), (1, dIp)).astype(jnp.float32)
    phi_xt = pad_to(jnp.transpose(phi_x, (0, 2, 1)), (B, dIp, Npp)).astype(jnp.bfloat16)
    g_pad = pad_to(g_x, (B, Npp, dIp)).astype(jnp.bfloat16)
    w_pad = pad_to(w_eff, (dIp, Cp)).astype(jnp.bfloat16)
    b_pad = pad_to(b_eff.reshape(1, C), (1, Cp)).astype(jnp.float32)
    mask_row = jnp.where(jnp.arange(Npp)[None, :] < Np, 0.0, -1e30).astype(jnp.float32)

    out_pad = nonlocal_attention(x_pad, theta_wT, theta_b, phi_xt, g_pad,
                                 w_pad, b_pad, mask_row, tN, vmem_limit,
                                 use_bf16_exp)
    out_flat = out_pad[:, :N, :C]
    return jnp.transpose(out_flat.reshape(B, H, W, C), (0, 3, 1, 2))


def nonlocal_block_reference(params, x):
    """Pure-JAX f32 reference of the PyTorch forward (eval-mode BN)."""
    B, C, H, W = x.shape
    dI = params["theta_w"].shape[0]
    N = H * W
    Hp, Wp = H // 2, W // 2
    Np = Hp * Wp

    x_flat = jnp.transpose(x, (0, 2, 3, 1)).reshape(B, N, C)
    conv = lambda xf, wgt, b: xf @ wgt.T + b
    theta_x = conv(x_flat, params["theta_w"], params["theta_b"])
    phi_full = conv(x_flat, params["phi_w"], params["phi_b"])
    g_full = conv(x_flat, params["g_w"], params["g_b"])
    pool = lambda v: jnp.max(v.reshape(B, Hp, 2, Wp, 2, dI), axis=(2, 4)).reshape(B, Np, dI)
    phi_x = pool(phi_full)
    g_x = pool(g_full)

    f = jnp.einsum("bnd,bmd->bnm", theta_x, phi_x)
    attn = jax.nn.softmax(f, axis=-1)
    y = jnp.einsum("bnm,bmd->bnd", attn, g_x)

    eps = 1e-5
    s = params["bn_gamma"] / jnp.sqrt(params["bn_var"] + eps)
    w_eff = params["W_w"].T * s[None, :]
    b_eff = (params["W_b"] - params["bn_mean"]) * s + params["bn_beta"]
    out_flat = y @ w_eff + b_eff + x_flat
    return jnp.transpose(out_flat.reshape(B, H, W, C), (0, 3, 1, 2))


# ----------------------------------- main ------------------------------------
if __name__ == "__main__":
    key = jax.random.PRNGKey(0)
    k_param, k_x = jax.random.split(key)

    B, C, H, W = 2, 4, 16, 16
    params = init_params(k_param, C)
    x = jax.random.normal(k_x, (B, C, H, W), dtype=jnp.float32)

    z = jax.block_until_ready(nonlocal_block_forward(params, x))
    z_ref = jax.block_until_ready(nonlocal_block_reference(params, x))

    assert z.shape == (B, C, H, W)
    # bf16 streamed x / bf16 MXU operands / bf16 exp (v6e+) / approx EUP
    # reciprocal change rounding vs the f32 reference; tolerance loosened.
    assert jnp.allclose(z, z_ref, atol=1e-2, rtol=1e-2), "mismatch vs reference"

    print("KERNEL_OK")
</pallas_src>

<mosaic_0001>
module attributes {stable_mosaic.version = 11 : i64} {
  func.func @_nonlocal_kernel(%arg0: i32, %arg1: i32, %arg2: memref<1x256x128xbf16, #tpu.memory_space<vmem>>, %arg3: memref<128x128xbf16, #tpu.memory_space<vmem>>, %arg4: memref<1x128xf32, #tpu.memory_space<vmem>>, %arg5: memref<1x128x128xbf16, #tpu.memory_space<vmem>>, %arg6: memref<1x128x128xbf16, #tpu.memory_space<vmem>>, %arg7: memref<128x128xbf16, #tpu.memory_space<vmem>>, %arg8: memref<1x128xf32, #tpu.memory_space<vmem>>, %arg9: memref<1x128xf32, #tpu.memory_space<vmem>>, %arg10: memref<1x256x128xf32, #tpu.memory_space<vmem>>) attributes {dimension_semantics = [#tpu.dimension_semantics<parallel>, #tpu.dimension_semantics<parallel>], iteration_bounds = array<i64: 2, 1>, scalar_prefetch = 0 : i64, scratch_operands = 0 : i64, tpu.core_type = #tpu.core_type<tc>, window_params = [{transform_indices = @transform_0, window_bounds = array<i64: 1, 256, 128>}, {pipeline_mode = #tpu.pipeline_mode<synchronous>, transform_indices = @transform_1, window_bounds = array<i64: 128, 128>}, {pipeline_mode = #tpu.pipeline_mode<synchronous>, transform_indices = @transform_2, window_bounds = array<i64: 1, 128>}, {pipeline_mode = #tpu.pipeline_mode<synchronous>, transform_indices = @transform_3, window_bounds = array<i64: 1, 128, 128>}, {pipeline_mode = #tpu.pipeline_mode<synchronous>, transform_indices = @transform_4, window_bounds = array<i64: 1, 128, 128>}, {pipeline_mode = #tpu.pipeline_mode<synchronous>, transform_indices = @transform_5, window_bounds = array<i64: 128, 128>}, {pipeline_mode = #tpu.pipeline_mode<synchronous>, transform_indices = @transform_6, window_bounds = array<i64: 1, 128>}, {pipeline_mode = #tpu.pipeline_mode<synchronous>, transform_indices = @transform_7, window_bounds = array<i64: 1, 128>}, {transform_indices = @transform_8, window_bounds = array<i64: 1, 256, 128>}]} {
    %c0 = arith.constant 0 : index
    %c0_0 = arith.constant 0 : index
    %c0_1 = arith.constant 0 : index
    %0 = vector.load %arg2[%c0, %c0_0, %c0_1] : memref<1x256x128xbf16, #tpu.memory_space<vmem>>, vector<1x256x128xbf16>
    %1 = vector.shape_cast %0 : vector<1x256x128xbf16> to vector<256x128xbf16>
    %c0_2 = arith.constant 0 : index
    %c0_3 = arith.constant 0 : index
    %2 = vector.load %arg3[%c0_2, %c0_3] : memref<128x128xbf16, #tpu.memory_space<vmem>>, vector<128x128xbf16>
    %cst = arith.constant dense<0.000000e+00> : vector<256x128xf32>
    %3 = tpu.matmul %1, %2, %cst {dimension_numbers = #tpu.dot_dimension_numbers<[1], [0], [0], [1], [0, 0, 1, 1], [], []>} : vector<256x128xbf16>, vector<128x128xbf16>, vector<256x128xf32> -> vector<256x128xf32>
    %c0_4 = arith.constant 0 : index
    %c0_5 = arith.constant 0 : index
    %4 = vector.load %arg4[%c0_4, %c0_5] : memref<1x128xf32, #tpu.memory_space<vmem>>, vector<1x128xf32>
    %5 = vector.broadcast %4 : vector<1x128xf32> to vector<256x128xf32>
    %6 = arith.addf %3, %5 : vector<256x128xf32>
    %7 = arith.truncf %6 : vector<256x128xf32> to vector<256x128xbf16>
    %c0_6 = arith.constant 0 : index
    %c0_7 = arith.constant 0 : index
    %c0_8 = arith.constant 0 : index
    %8 = vector.load %arg5[%c0_6, %c0_7, %c0_8] : memref<1x128x128xbf16, #tpu.memory_space<vmem>>, vector<1x128x128xbf16>
    %9 = vector.shape_cast %8 : vector<1x128x128xbf16> to vector<128x128xbf16>
    %cst_9 = arith.constant dense<0.000000e+00> : vector<256x128xf32>
    %10 = tpu.matmul %7, %9, %cst_9 {dimension_numbers = #tpu.dot_dimension_numbers<[1], [0], [0], [1], [0, 0, 1, 1], [], []>} : vector<256x128xbf16>, vector<128x128xbf16>, vector<256x128xf32> -> vector<256x128xf32>
    %c0_10 = arith.constant 0 : index
    %c0_11 = arith.constant 0 : index
    %11 = vector.load %arg9[%c0_10, %c0_11] : memref<1x128xf32, #tpu.memory_space<vmem>>, vector<1x128xf32>
    %12 = vector.broadcast %11 : vector<1x128xf32> to vector<256x128xf32>
    %13 = arith.addf %10, %12 : vector<256x128xf32>
    %cst_12 = arith.constant dense<0xFF800000> : vector<256xf32>
    %14 = vector.multi_reduction <maximumf>, %13, %cst_12 [1] : vector<256x128xf32> to vector<256xf32>
    %15 = vector.shape_cast %14 : vector<256xf32> to vector<256x1xf32>
    %16 = vector.broadcast %15 : vector<256x1xf32> to vector<256x128xf32>
    %17 = arith.subf %13, %16 : vector<256x128xf32>
    %18 = math.exp %17 : vector<256x128xf32>
    %cst_13 = arith.constant dense<0.000000e+00> : vector<256xf32>
    %19 = vector.multi_reduction <add>, %18, %cst_13 [1] : vector<256x128xf32> to vector<256xf32>
    %20 = vector.shape_cast %19 : vector<256xf32> to vector<256x1xf32>
    %21 = arith.truncf %18 : vector<256x128xf32> to vector<256x128xbf16>
    %c0_14 = arith.constant 0 : index
    %c0_15 = arith.constant 0 : index
    %c0_16 = arith.constant 0 : index
    %22 = vector.load %arg6[%c0_14, %c0_15, %c0_16] : memref<1x128x128xbf16, #tpu.memory_space<vmem>>, vector<1x128x128xbf16>
    %23 = vector.shape_cast %22 : vector<1x128x128xbf16> to vector<128x128xbf16>
    %cst_17 = arith.constant dense<0.000000e+00> : vector<256x128xf32>
    %24 = tpu.matmul %21, %23, %cst_17 {dimension_numbers = #tpu.dot_dimension_numbers<[1], [0], [0], [1], [0, 0, 1, 1], [], []>} : vector<256x128xbf16>, vector<128x128xbf16>, vector<256x128xf32> -> vector<256x128xf32>
    %25 = tpu.reciprocal %20 {approx = true} : vector<256x1xf32> -> vector<256x1xf32>
    %26 = vector.broadcast %25 : vector<256x1xf32> to vector<256x128xf32>
    %27 = arith.mulf %24, %26 : vector<256x128xf32>
    %28 = arith.truncf %27 : vector<256x128xf32> to vector<256x128xbf16>
    %c0_18 = arith.constant 0 : index
    %c0_19 = arith.constant 0 : index
    %29 = vector.load %arg7[%c0_18, %c0_19] : memref<128x128xbf16, #tpu.memory_space<vmem>>, vector<128x128xbf16>
    %cst_20 = arith.constant dense<0.000000e+00> : vector<256x128xf32>
    %30 = tpu.matmul %28, %29, %cst_20 {dimension_numbers = #tpu.dot_dimension_numbers<[1], [0], [0], [1], [0, 0, 1, 1], [], []>} : vector<256x128xbf16>, vector<128x128xbf16>, vector<256x128xf32> -> vector<256x128xf32>
    %c0_21 = arith.constant 0 : index
    %c0_22 = arith.constant 0 : index
    %31 = vector.load %arg8[%c0_21, %c0_22] : memref<1x128xf32, #tpu.memory_space<vmem>>, vector<1x128xf32>
    %32 = vector.broadcast %31 : vector<1x128xf32> to vector<256x128xf32>
    %33 = arith.addf %30, %32 : vector<256x128xf32>
    %34 = arith.extf %1 : vector<256x128xbf16> to vector<256x128xf32>
    %35 = arith.addf %33, %34 : vector<256x128xf32>
    %c0_23 = arith.constant 0 : index
    %c0_24 = arith.constant 0 : index
    %c0_25 = arith.constant 0 : index
    %36 = vector.load %arg10[%c0_23, %c0_24, %c0_25] : memref<1x256x128xf32, #tpu.memory_space<vmem>>, vector<1x256x128xf32>
    %37 = vector.shape_cast %36 : vector<1x256x128xf32> to vector<256x128xf32>
    %38 = vector.shape_cast %35 : vector<256x128xf32> to vector<1x256x128xf32>
    tpu.vector_store %arg10[%c0_23, %c0_24, %c0_25], %38 {strides = array<i32>} : memref<1x256x128xf32, #tpu.memory_space<vmem>>, vector<1x256x128xf32>,
    return
  }
  func.func @transform_0(%arg0: i32, %arg1: i32) -> (i32, i32, i32) {
    %c0_i32 = arith.constant 0 : i32
    %c0_i32_0 = arith.constant 0 : i32
    return %arg0, %arg1, %c0_i32 : i32, i32, i32
  }
  func.func @transform_1(%arg0: i32, %arg1: i32) -> (i32, i32) {
    %c0_i32 = arith.constant 0 : i32
    %c0_i32_0 = arith.constant 0 : i32
    %c0_i32_1 = arith.constant 0 : i32
    return %c0_i32, %c0_i32_0 : i32, i32
  }
  func.func @transform_2(%arg0: i32, %arg1: i32) -> (i32, i32) {
    %c0_i32 = arith.constant 0 : i32
    %c0_i32_0 = arith.constant 0 : i32
    %c0_i32_1 = arith.constant 0 : i32
    return %c0_i32, %c0_i32_0 : i32, i32
  }
  func.func @transform_3(%arg0: i32, %arg1: i32) -> (i32, i32, i32) {
    %c0_i32 = arith.constant 0 : i32
    %c0_i32_0 = arith.constant 0 : i32
    %c0_i32_1 = arith.constant 0 : i32
    return %arg0, %c0_i32, %c0_i32_0 : i32, i32, i32
  }
  func.func @transform_4(%arg0: i32, %arg1: i32) -> (i32, i32, i32) {
    %c0_i32 = arith.constant 0 : i32
    %c0_i32_0 = arith.constant 0 : i32
    %c0_i32_1 = arith.constant 0 : i32
    return %arg0, %c0_i32, %c0_i32_0 : i32, i32, i32
  }
  func.func @transform_5(%arg0: i32, %arg1: i32) -> (i32, i32) {
    %c0_i32 = arith.constant 0 : i32
    %c0_i32_0 = arith.constant 0 : i32
    %c0_i32_1 = arith.constant 0 : i32
    return %c0_i32, %c0_i32_0 : i32, i32
  }
  func.func @transform_6(%arg0: i32, %arg1: i32) -> (i32, i32) {
    %c0_i32 = arith.constant 0 : i32
    %c0_i32_0 = arith.constant 0 : i32
    %c0_i32_1 = arith.constant 0 : i32
    return %c0_i32, %c0_i32_0 : i32, i32
  }
  func.func @transform_7(%arg0: i32, %arg1: i32) -> (i32, i32) {
    %c0_i32 = arith.constant 0 : i32
    %c0_i32_0 = arith.constant 0 : i32
    %c0_i32_1 = arith.constant 0 : i32
    return %c0_i32, %c0_i32_0 : i32, i32
  }
  func.func @transform_8(%arg0: i32, %arg1: i32) -> (i32, i32, i32) {
    %c0_i32 = arith.constant 0 : i32
    %c0_i32_0 = arith.constant 0 : i32
    return %arg0, %arg1, %c0_i32 : i32, i32, i32
  }
}

</mosaic_0001>

<bundles_post_ra>
// kernel: tpu_custom_call.1
= control target key start
LH: loop header
LB: loop body
LE: loop exit
PB: predicated region body
PF: predicated region fallthrough
CT: control target
= control target key end

     0   :  { %s3102_s0 = inlined_call_operand.hbm [shape: bf16[2,256,128], index: 0, kind: input, shape index: {}]   ;;  %s3103_s1 = inlined_call_operand.hbm [shape: bf16[128,128], index: 1, kind: input, shape index: {}]   ;;  %s3104_s2 = inlined_call_operand.vmem [shape: f32[1,128], index: 2, kind: input, shape index: {}]   ;;  %s3105_s3 = inlined_call_operand.hbm [shape: bf16[2,128,128], index: 3, kind: input, shape index: {}]   ;;  %s3106_s4 = inlined_call_operand.hbm [shape: bf16[2,128,128], index: 4, kind: input, shape index: {}]   ;;  %s3107_s5 = inlined_call_operand.hbm [shape: bf16[128,128], index: 5, kind: input, shape index: {}]   ;;  %s3108_s6 = inlined_call_operand.vmem [shape: f32[1,128], index: 6, kind: input, shape index: {}]   ;;  %s3109_s7 = inlined_call_operand.vmem [shape: f32[1,128], index: 7, kind: input, shape index: {}]   ;;  %s3110_s8 = inlined_call_operand.hbm [shape: f32[2,256,128], index: 8, kind: output, shape index: {}]  }
   0x1   :  { %3119 = sst [smem:[#allocation21_spill]] %s3103_s1 }
   0x2   :  { %3120 = sst [smem:[#allocation22_spill]] %s3108_s6 }
   0x3   :  { %3121 = sst [smem:[#allocation23_spill]] %s3110_s8 }
   0x4   :  { %13 = vsyncpa [#allocation3], 0 }
   0x5   :  { %15 = vsyncpa [#allocation3 + $0x1], 0 }
   0x6   :  { %16 = vsyncpa [#allocation6], 0 }
   0x7   :  { %17 = vsyncpa [#allocation9], 0 }
   0x8   :  { %18 = vsyncpa [#allocation4], 0 }
   0x9   :  { %20 = vsyncpa [#allocation4 + $0x1], 0  ;;  %s2559_s27 = smov 0   ;;  %s2561_s28 = smov 0  }
   0xa   :  { %s2563_s29 = smov 0   ;;  %s2565_s30 = smov 0  }
   0xb   :  { %s2567_s9 = smov 0   ;;  %s2569_s10 = smov 0  }
   0xc LB: > { %3122 = sst [smem:[#allocation18_spill]] %s2484_s27  ;;  %s1759_s14 = sadd.s32 4294967295, %s2504_s10   ;;  %s2504_s10 = sphi %s2569_s10, %s26_s10   ;;  %s2500_s9 = sphi %s2567_s9, %s3148_s9   ;;  %s2496_s30 = sphi %s2565_s30, %s3147_s30   ;;  %s2492_s29 = sphi %s2563_s29, %s3146_s29   ;;  %s2488_s28 = sphi %s2561_s28, %s3145_s28   ;;  %s2484_s27 = sphi %s2559_s27, %s3144_s27  }
   0xd   : > { %3123 = sst [smem:[#allocation19_spill]] %s2496_s30  ;;  %p1761_p0 = scmp.ge.s32.totalorder %s2504_s10, 1 }
   0xe   : > { %s3124_s1 = sld [smem:[#allocation21_spill]]  ;;  %p2594_p1 = scmp.eq.s32.totalorder %s1759_s14, 0 }
   0xf   : > { %p2598_p2 = scmp.eq.s32.totalorder %s1759_s14, 1  ;;  %p256_p3 = scmp.lt.s32.totalorder %s2504_s10, 3 }
  0x10   : > { %s2506_s18 = smov [#allocation5]   ;;  %s3111_s21 = smov 64  }
  0x11   : > { %p2603_p4 = pnand %p1761_p0, %p256_p3  ;;  %s269_s19 = sshll.u32 %s2506_s18, 4  ;;  %s270_s19 = int_to_ptr.vmem [resolvable:$true] %s269_s19 }
  0x12   : > { %s3113_s22 = smov 4   ;;  %s1760_s23 = sadd.s32 4294967294, %s2504_s10  }
  0x13   : > { %p2042_p5 = pneg %p2603_p4  ;;  %p60_p8 = scmp.ne.s32.totalorder %s2488_s28, %s2484_s27 }
  0x14   : > { %s267_s13 = sshll.u32 %s3124_s1, 4  ;;  %p249_p9 = scmp.eq.s32.totalorder %s1760_s23, 1  ;;  %s268_s13 = int_to_ptr.hbm [resolvable:$true] %s267_s13 }
  0x15   : > { %p2615_p7 = pnand %p2042_p5, %p2594_p1  ;;  %s1974_s24 = sshll.u32 %s2496_s30, 6 }
  0x16   : > { %p2630_p10 = por %p2594_p1, %p60_p8  ;;  %s286_s12 = scalar_lea.hbm %s3105_s3, %s1974_s24 }
  0x17   : > { %2045 = dma.hbm_to_vmem [thread:$0]  (!%p2615_p7), %s268_s13, 1024, %s270_s19, [#allocation6], %s3111_s21, %s3111_s21, %s3113_s22  }
  0x18   : > { %p2637_p11 = por %p249_p9, %p60_p8  ;;  %s287_s18 = sshll.u32 %s286_s12, 4  ;;  %s2653_s18 = int_to_ptr.hbm [resolvable:$true] %s287_s18 }
  0x19   : > { %p2646_p12 = pnand %p2042_p5, %p2630_p10  ;;  %s303_s26 = scalar_lea.hbm %s3106_s4, %s1974_s24 }
  0x1a   : > { %s3130_s14 = scalar_select %p2637_p11, 1, 0 }
  0x1b   : > { %s304_s11 = sshll.u32 %s303_s26, 4  ;;  %s2509_s21 = smov [#allocation8]   ;;  %s305_s11 = int_to_ptr.hbm [resolvable:$true] %s304_s11 }
  0x1c   : > { %3131 = sst [smem:[#allocation20_spill]] %s3130_s14  ;;  %s306_s22 = sshll.u32 %s2509_s21, 4  ;;  %s307_s22 = int_to_ptr.vmem [resolvable:$true] %s306_s22 }
  0x1d   : > { %s2286_s12 = sshra.s32 %s305_s11, 4  ;;  %p2290_p0 = pneg %p2646_p12  ;;  %s2287_s12 = int_to_ptr.hbm [resolvable:$true] %s2286_s12 }
  0x1e   : > { %s2288_s1 = scalar_lea.hbm %s2287_s12, 64  ;;  %s2293_s24 = scalar_lea.hbm %s3106_s4, 128 }
  0x1f   : > { %p2289_p13 = scmp.ne.s32.totalorder %s2287_s12, %s2288_s1  ;;  %p2294_p8 = scmp.lt.s32.totalorder %s2287_s12, %s3106_s4 }
  0x20   : > { %p2295_p9 = scmp.lt.s32.totalorder %s2293_s24, %s2288_s1 }
  0x21   : > { %p2291_p3 = pnand %p2290_p0, %p2289_p13 }
  0x22   : > { %p2296_p6 = por %p2295_p9, %p2294_p8 }
  0x23   : > { %p2292_p5 = pneg %p2291_p3 }
  0x25   : > { %p2297_p11 = pnand %p2296_p6, %p2292_p5 }
  0x27   : > { %2300 = shalt.err (!%p2297_p11)
}
  0x28   : > { %s3133_s21 = smov 4   ;;  %s3134_s27 = smov 64  }
  0x29   : > { %2051 = dma.hbm_to_vmem [thread:$0]  (!%p2646_p12), %s305_s11, 1024, %s307_s22, [#allocation9], %s3134_s27, %s3134_s27, %s3133_s21  }
  0x2a   : > { %s2510_s8 = smov [#allocation7]   ;;  %s318_s6 = sshll.u32 %s3107_s5, 4  ;;  %s319_s6 = int_to_ptr.hbm [resolvable:$true] %s318_s6 }
  0x2b   : > { %s289_s30 = sshll.u32 %s2510_s8, 4  ;;  %s2316_s1 = sshra.s32 %s2653_s18, 4  ;;  %s290_s30 = int_to_ptr.vmem [resolvable:$true] %s289_s30  ;;  %s2317_s1 = int_to_ptr.hbm [resolvable:$true] %s2316_s1 }
  0x2c   : > { %s2318_s14 = scalar_lea.hbm %s2317_s1, 64  ;;  %s2323_s22 = scalar_lea.hbm %s3105_s3, 128 }
  0x2d   : > { %p2319_p6 = scmp.ne.s32.totalorder %s2317_s1, %s2318_s14  ;;  %p2324_p3 = scmp.lt.s32.totalorder %s2317_s1, %s3105_s3 }
  0x2e   : > { %p2325_p5 = scmp.lt.s32.totalorder %s2323_s22, %s2318_s14 }
  0x2f   : > { %p2321_p11 = pnand %p2319_p6, %p2290_p0 }
  0x30   : > { %p2326_p8 = por %p2325_p5, %p2324_p3 }
  0x31   : > { %p2322_p13 = pneg %p2321_p11 }
  0x33   : > { %p2327_p9 = pnand %p2326_p8, %p2322_p13 }
  0x35   : > { %2330 = shalt.err (!%p2327_p9)
}
  0x36   : > { %2048 = dma.hbm_to_vmem [thread:$0]  (!%p2646_p12), %s2653_s18, 1024, %s290_s30, [#allocation6], %s3134_s27, %s3134_s27, %s3133_s21  }
  0x37   : > { %s2511_s26 = smov [#allocation10]   ;;  %s38_s13 = sadd.s32 1, %s2500_s9 }
  0x38   : > { %s320_s19 = sshll.u32 %s2511_s26, 4  ;;  %p40_p0 = scmp.ge.s32.totalorder %s38_s13, 2  ;;  %s321_s19 = int_to_ptr.vmem [resolvable:$true] %s320_s19 }
  0x39   : > { %2054 = dma.hbm_to_vmem [thread:$0]  (!%p2615_p7), %s319_s6, 1024, %s321_s19, [#allocation9], %s3134_s27, %s3134_s27, %s3133_s21  }
  0x3a   : > { %s47_s23 = sadd.s32 1, %s2492_s29  ;;  %p54_p6 = scmp.ne.s32.totalorder %s2492_s29, %s2488_s28 }
  0x3b   : > { %p55_p11 = scmp.eq.s32.totalorder %s2504_s10, 0  ;;  %s3150_s13 = smov (%p40_p0, %s38_s13), 0 }
  0x3c   : > { %p2708_p13 = por %p2598_p2, %p54_p6  ;;  %s42_s18 = ssub.s32 %s2500_s9, %s3150_s13 }
  0x3d   : > { %p2702_p12 = por %p55_p11, %p54_p6  ;;  %p2065_p7 = scmp.lt.s32.totalorder %s2504_s10, 2 }
  0x3e   : > { %p45_p3 = scmp.eq.s32.totalorder %s42_s18, 0  ;;  %s340_s6 = sand.u32 1, %s2492_s29  }
  0x3f   : > { %s1769_s1 = sshll.u32 %s340_s6, 7  ;;  %s1976_s12 = sshll.u32 %s2500_s9, 7 }
  0x40   : > { %s2717_s14 = scalar_select %p45_p3, %s2492_s29, %s47_s23  }
  0x41   : > { %s351_s11 = scalar_lea.hbm %s3102_s0, %s1976_s12  ;;  %s344_s8 = scalar_lea.vmem [#allocation2], %s1769_s1 }
  0x42   : > { %s354_s26 = sshll.u32 %s344_s8, 4  ;;  %s352_s16 = sshll.u32 %s351_s11, 4  ;;  %s355_s26 = int_to_ptr.vmem [resolvable:$true] %s354_s26  ;;  %s353_s16 = int_to_ptr.hbm [resolvable:$true] %s352_s16 }
  0x43   : > { %p2056_p2 = pnand %p2065_p7, %p2702_p12  ;;  %s341_s19 = scalar_lea.sflag [#allocation3], %s340_s6 }
  0x44   : > { %366 = sbr.rel (%p2603_p4) target bundleno = 1049 (0x419), region = 52  ;;  %s2731_s23 = sand.u32 (!%p2603_p4), 1, %s2488_s28  }
  0x45   : > { %2058 = dma.hbm_to_vmem [thread:$0]  (!%p2056_p2), %s353_s16, 2048, %s355_s26, %s341_s19, %s3134_s27, %s3134_s27, %s3133_s21  }
  0x46   : > { %s1773_s18 = sshll.u32 (!%p2603_p4), %s2731_s23, 7  ;;  %s369_s1 = scalar_lea.sflag (!%p2603_p4), [#allocation3], %s2731_s23 }
  0x47   : > { %s2735_s12 = scalar_lea.vmem (!%p2603_p4), [#allocation2], %s1773_s18 }
  0x49   : > { %2459 = dma.done.wait (%p2630_p10), %s369_s1, 2048  }
  0x4a   : > { %2461 = vsyncadd (%p2630_p10), %s369_s1, 4294965248 }
  0x4b   : > { %2463 = dma.done.wait (%p2594_p1), [#allocation6], 1024  }
  0x4c   : > { %2465 = vsyncadd (%p2594_p1), [#allocation6], 4294966272 }
  0x4d   : > { %2467 = dma.done.wait (%p2630_p10), [#allocation6], 1024  }
  0x4e   : > { %2469 = vsyncadd (%p2630_p10), [#allocation6], 4294966272 }
  0x4f   : > { %2471 = dma.done.wait (%p2630_p10), [#allocation9], 1024  }
  0x50   : > { %2473 = vsyncadd (%p2630_p10), [#allocation9], 4294966272 }
  0x51   : > { %2475 = dma.done.wait (%p2594_p1), [#allocation9], 1024  }
  0x52   : > { %2477 = vsyncadd (%p2594_p1), [#allocation9], 4294966272  ;;  %v2000_v0 = vld [vmem:[#allocation5 + $0x38] sm:$0xff]  ;;  %v1999_v1 = vld [vmem:[#allocation5 + $0x30] sm:$0xff]  ;;  %s3137_s6 = sld [smem:[#allocation22_spill]]  ;;  %s1776_s24 = sshll.u32 %s2731_s23, 8 }
  0x53   : > { %624 = vmatpush.bf16.msra.mxu0 %v2000_v0  ;;  %v1998_v2 = vld [vmem:[#allocation5 + $0x28] sm:$0xff]  ;;  %v1997_v3 = vld [vmem:[#allocation5 + $0x20] sm:$0xff]  ;;  %v1996_v4 = vld [vmem:[#allocation5 + $0x18] sm:$0xff]  ;;  %s2983_s22 = scalar_lea.vmem [#allocation11], %s1776_s24  ;;  %s3138_s11 = sld [smem:[#allocation19_spill]] }
  0x54   : > { %v1995_v5 = vld [vmem:[#allocation5 + $0x10] sm:$0xff]  ;;  %v1994_v6 = vld [vmem:[#allocation5 + $0x8] sm:$0xff]  ;;  %v1993_v7 = vld [vmem:[#allocation5] sm:$0xff]  ;;  %s3139_s19 = sld [smem:[#allocation23_spill]]  ;;  %s1627_s1 = sshll.u32 %s2983_s22, 4  ;;  %s1628_s1 = int_to_ptr.vmem [resolvable:$true] %s1627_s1 }
  0x55   : > { %v1977_v8 = vld [vmem:[%s2735_s12] sm:$0xff]  ;;  %v1978_v9 = vld [vmem:[%s2735_s12 + $0x8] sm:$0xff]  ;;  %v1979_v10 = vld [vmem:[%s2735_s12 + $0x10] sm:$0xff] }
  0x56   : > { %v1980_v11 = vld [vmem:[%s2735_s12 + $0x18] sm:$0xff]  ;;  %v1981_v12 = vld [vmem:[%s2735_s12 + $0x20] sm:$0xff]  ;;  %v2007_v14 = vld [vmem:[#allocation7 + $0x30] sm:$0xff] }
  0x57   : > { %625 = vmatpush.bf16.msra.mxu0 %v1999_v1  ;;  %v2008_v13 = vld [vmem:[#allocation7 + $0x38] sm:$0xff]  ;;  %v1982_v15 = vld [vmem:[%s2735_s12 + $0x28] sm:$0xff]  ;;  %v2005_v17 = vld [vmem:[#allocation7 + $0x20] sm:$0xff] }
  0x58   : > { %797 = vmatpush.bf16.msra.mxu1 %v2008_v13  ;;  %v2006_v16 = vld [vmem:[#allocation7 + $0x28] sm:$0xff]  ;;  %v2004_v18 = vld [vmem:[#allocation7 + $0x18] sm:$0xff]  ;;  %v1983_v19 = vld [vmem:[%s2735_s12 + $0x30] sm:$0xff] }
  0x59   : > { %v2003_v20 = vld [vmem:[#allocation7 + $0x10] sm:$0xff]  ;;  %v2002_v21 = vld [vmem:[#allocation7 + $0x8] sm:$0xff]  ;;  %v2001_v22 = vld [vmem:[#allocation7] sm:$0xff]  ;;  %s2025_s8 = sshll.u32 %s3138_s11, 8 }
  0x5a   : > { %v1984_v23 = vld [vmem:[%s2735_s12 + $0x38] sm:$0xff]  ;;  %v1985_v24 = vld [vmem:[%s2735_s12 + $0x40] sm:$0xff]  ;;  %v1986_v31 = vld [vmem:[%s2735_s12 + $0x48] sm:$0xff]  ;;  %s1626_s18 = scalar_lea.hbm %s3139_s19, %s2025_s8  ;;  %s2426_s30 = scalar_lea.hbm %s3139_s19, 512 }
  0x5b   : > { %626 = vmatpush.bf16.msra.mxu0 %v1998_v2  ;;  %v2769_v26 = vld [vmem:[%s3104_s2] ss:$0 sm:$0xff]  ;;  %v1987_v37 = vld [vmem:[%s2735_s12 + $0x50] sm:$0xff]  ;;  %v1988_v43 = vld [vmem:[%s2735_s12 + $0x58] sm:$0xff]  ;;  %s1629_s27 = sshll.u32 %s1626_s18, 4  ;;  %s1630_s27 = int_to_ptr.hbm [resolvable:$true] %s1629_s27 }
  0x5c   : > { %798 = vmatpush.bf16.msra.mxu1 %v2007_v14  ;;  %v1989_v49 = vld [vmem:[%s2735_s12 + $0x60] sm:$0xff]  ;;  %v1990_v55 = vld [vmem:[%s2735_s12 + $0x68] sm:$0xff]  ;;  %v1991_v61 = vld [vmem:[%s2735_s12 + $0x70] sm:$0xff]  ;;  %s2420_s15 = sshra.s32 %s1630_s27, 4  ;;  %s2421_s15 = int_to_ptr.hbm [resolvable:$true] %s2420_s15 }
  0x5d   : > { %s2422_s17 = scalar_lea.hbm %s2421_s15, 256  ;;  %p2427_p5 = scmp.lt.s32.totalorder %s2421_s15, %s3139_s19 }
  0x5e   : > { %p2423_p1 = scmp.ne.s32.totalorder %s2421_s15, %s2422_s17  ;;  %p2428_p8 = scmp.lt.s32.totalorder %s2426_s30, %s2422_s17 }
  0x5f   : > { %627 = vmatpush.bf16.msra.mxu0 %v1997_v3  ;;  %v1992_v3 = vld [vmem:[%s2735_s12 + $0x78] sm:$0xff] }
  0x60   : > { %799 = vmatpush.bf16.msra.mxu1 %v2006_v16  ;;  %p2424_p4 = pnand %p2423_p1, %p2708_p13  ;;  %p2429_p9 = por %p2428_p8, %p2427_p5 }
  0x62   : > { %p2425_p10 = pneg %p2424_p4 }
  0x63   : > { %628 = vmatpush.bf16.msra.mxu0 %v1996_v4 }
  0x64   : > { %800 = vmatpush.bf16.msra.mxu1 %v2005_v17  ;;  %p2430_p0 = pnand %p2429_p9, %p2425_p10 }
  0x67   : > { %629 = vmatpush.bf16.msra.mxu0 %v1995_v5 }
  0x68   : > { %801 = vmatpush.bf16.msra.mxu1 %v2004_v18 }
  0x6b   : > { %630 = vmatpush.bf16.msra.mxu0 %v1994_v6 }
  0x6c   : > { %802 = vmatpush.bf16.msra.mxu1 %v2003_v20 }
  0x6f   : > { %631 = vmatpush.bf16.msra.mxu0 %v1993_v7 }
  0x70   : > { %803 = vmatpush.bf16.msra.mxu1 %v2002_v21 }
  0x72   : > { %632 = vmatmul.bf16.vlgmr.msra.gmra.mxu0 %v1977_v8 }
  0x74   : > { %804 = vmatpush.bf16.msra.mxu1 %v2001_v22 }
  0x82   : > { %637 = vmatmul.bf16.gmra.mxu0 %v1978_v9 }
  0x92   : > { %642 = vmatmul.bf16.gmra.mxu0 %v1979_v10  ;;  %v2797_v10 = vld [vmem:[%s3109_s7] ss:$0 sm:$0xff] }
  0xa2   : > { %647 = vmatmul.bf16.gmra.mxu0 %v1980_v11 }
  0xb2   : > { %652 = vmatmul.bf16.gmra.mxu0 %v1981_v12 }
  0xc2   : > { %657 = vmatmul.bf16.gmra.mxu0 %v1982_v15 }
  0xd2   : > { %662 = vmatmul.bf16.gmra.mxu0 %v1983_v19 }
  0xe2   : > { %667 = vmatmul.bf16.gmra.mxu0 %v1984_v23 }
  0xef   : > { %v633_v25 = vpop.f32.mrf.mxu0 }
  0xf0   : > { %v634_v28 = vadd.f32 %v2769_v26, %v633_v25 }
  0xf2   : > { %672 = vmatmul.bf16.gmra.mxu0 %v1985_v24 }
  0xf7   : > { %v635_v27 = vpop.f32.mrf.mxu0 }
  0xf8   : > { %v636_v29 = vadd.f32 %v2769_v26, %v635_v27 }
  0xfa   : > { %v713_v30 = vpack.c.bf16 %v636_v29, %v634_v28 }
  0xfc   : > { %805 = vmatmul.bf16.vlgmr.msra.gmra.mxu1 %v713_v30 }
  0xff   : > { %v638_v32 = vpop.f32.mrf.mxu0 }
 0x100   : > { %v639_v34 = vadd.f32 %v2769_v26, %v638_v32 }
 0x102   : > { %677 = vmatmul.bf16.gmra.mxu0 %v1986_v31 }
 0x107   : > { %v640_v33 = vpop.f32.mrf.mxu0 }
 0x108   : > { %v641_v35 = vadd.f32 %v2769_v26, %v640_v33 }
 0x10a   : > { %v714_v36 = vpack.c.bf16 %v641_v35, %v639_v34 }
 0x10c   : > { %810 = vmatmul.bf16.gmra.mxu1 %v714_v36 }
 0x10f   : > { %v643_v38 = vpop.f32.mrf.mxu0 }
 0x110   : > { %v644_v40 = vadd.f32 %v2769_v26, %v643_v38 }
 0x112   : > { %682 = vmatmul.bf16.gmra.mxu0 %v1987_v37 }
 0x117   : > { %v645_v39 = vpop.f32.mrf.mxu0 }
 0x118   : > { %v646_v41 = vadd.f32 %v2769_v26, %v645_v39 }
 0x11a   : > { %v715_v42 = vpack.c.bf16 %v646_v41, %v644_v40 }
 0x11c   : > { %815 = vmatmul.bf16.gmra.mxu1 %v715_v42 }
 0x11f   : > { %v648_v44 = vpop.f32.mrf.mxu0 }
 0x120   : > { %v649_v46 = vadd.f32 %v2769_v26, %v648_v44 }
 0x122   : > { %687 = vmatmul.bf16.gmra.mxu0 %v1988_v43 }
 0x127   : > { %v650_v45 = vpop.f32.mrf.mxu0 }
 0x128   : > { %v651_v47 = vadd.f32 %v2769_v26, %v650_v45 }
 0x12a   : > { %v716_v48 = vpack.c.bf16 %v651_v47, %v649_v46 }
 0x12c   : > { %820 = vmatmul.bf16.gmra.mxu1 %v716_v48 }
 0x12f   : > { %v653_v50 = vpop.f32.mrf.mxu0 }
 0x130   : > { %v654_v52 = vadd.f32 %v2769_v26, %v653_v50 }
 0x132   : > { %692 = vmatmul.bf16.gmra.mxu0 %v1989_v49 }
 0x137   : > { %v655_v51 = vpop.f32.mrf.mxu0 }
 0x138   : > { %v656_v53 = vadd.f32 %v2769_v26, %v655_v51 }
 0x13a   : > { %v717_v54 = vpack.c.bf16 %v656_v53, %v654_v52 }
 0x13c   : > { %825 = vmatmul.bf16.gmra.mxu1 %v717_v54 }
 0x13f   : > { %v658_v56 = vpop.f32.mrf.mxu0 }
 0x140   : > { %v659_v58 = vadd.f32 %v2769_v26, %v658_v56 }
 0x142   : > { %697 = vmatmul.bf16.gmra.mxu0 %v1990_v55 }
 0x147   : > { %v660_v57 = vpop.f32.mrf.mxu0 }
 0x148   : > { %v661_v59 = vadd.f32 %v2769_v26, %v660_v57  ;;  %v2016_v57 = vld [vmem:[#allocation8 + $0x38] sm:$0xff] }
 0x149   : > { %1190 = vmatpush.bf16.msra.mxu2 %v2016_v57 }
 0x14a   : > { %v718_v60 = vpack.c.bf16 %v661_v59, %v659_v58 }
 0x14c   : > { %830 = vmatmul.bf16.gmra.mxu1 %v718_v60 }
 0x14f   : > { %v663_v62 = vpop.f32.mrf.mxu0 }
 0x150   : > { %v664_v0 = vadd.f32 %v2769_v26, %v663_v62 }
 0x152   : > { %702 = vmatmul.bf16.gmra.mxu0 %v1991_v61  ;;  %v2015_v61 = vld [vmem:[#allocation8 + $0x30] sm:$0xff] }
 0x153   : > { %1191 = vmatpush.bf16.msra.mxu2 %v2015_v61 }
 0x157   : > { %v665_v63 = vpop.f32.mrf.mxu0 }
 0x158   : > { %v666_v1 = vadd.f32 %v2769_v26, %v665_v63 }
 0x15a   : > { %v719_v2 = vpack.c.bf16 %v666_v1, %v664_v0  ;;  %v2014_v1 = vld [vmem:[#allocation8 + $0x28] sm:$0xff] }
 0x15b   : > { %1192 = vmatpush.bf16.msra.mxu2 %v2014_v1 }
 0x15c   : > { %835 = vmatmul.bf16.gmra.mxu1 %v719_v2 }
 0x15f   : > { %v668_v4 = vpop.f32.mrf.mxu0 }
 0x160   : > { %v669_v6 = vadd.f32 %v2769_v26, %v668_v4 }
 0x162   : > { %707 = vmatmul.bf16.gmra.mxu0 %v1992_v3  ;;  %v2013_v3 = vld [vmem:[#allocation8 + $0x20] sm:$0xff] }
 0x163   : > { %1193 = vmatpush.bf16.msra.mxu2 %v2013_v3 }
 0x167   : > { %v670_v5 = vpop.f32.mrf.mxu0 }
 0x168   : > { %v671_v7 = vadd.f32 %v2769_v26, %v670_v5 }
 0x16a   : > { %v720_v8 = vpack.c.bf16 %v671_v7, %v669_v6  ;;  %v2012_v6 = vld [vmem:[#allocation8 + $0x18] sm:$0xff] }
 0x16b   : > { %1194 = vmatpush.bf16.msra.mxu2 %v2012_v6 }
 0x16c   : > { %840 = vmatmul.bf16.gmra.mxu1 %v720_v8 }
 0x16f   : > { %v673_v9 = vpop.f32.mrf.mxu0 }
 0x170   : > { %v674_v12 = vadd.f32 %v2769_v26, %v673_v9 }
 0x177   : > { %v675_v11 = vpop.f32.mrf.mxu0 }
 0x178   : > { %v676_v13 = vadd.f32 %v2769_v26, %v675_v11  ;;  %v2011_v11 = vld [vmem:[#allocation8 + $0x10] sm:$0xff] }
 0x179   : > { %v806_v14 = vpop.f32.mrf.mxu1  ;;  %1195 = vmatpush.bf16.msra.mxu2 %v2011_v11 }
 0x17a   : > { %v2802_v15 = vadd.f32 %v2797_v10, %v806_v14  ;;  %v721_v16 = vpack.c.bf16 %v676_v13, %v674_v12 }
 0x17c   : > { %845 = vmatmul.bf16.gmra.mxu1 %v721_v16  ;;  %886 = vmax.xlane.f32.xlu0 %v2802_v15  ;;  %v2010_v16 = vld [vmem:[#allocation8 + $0x8] sm:$0xff] }
 0x17d   : > { %1196 = vmatpush.bf16.msra.mxu2 %v2010_v16 }
 0x17f   : > { %v678_v17 = vpop.f32.mrf.mxu0 }
 0x180   : > { %v679_v21 = vadd.f32 %v2769_v26, %v678_v17 }
 0x181   : > { %v808_v18 = vpop.f32.mrf.mxu1 }
 0x182   : > { %v2806_v19 = vadd.f32 %v2797_v10, %v808_v18  ;;  %v2009_v18 = vld [vmem:[#allocation8] sm:$0xff] }
 0x183   : > { %1197 = vmatpush.bf16.msra.mxu2 %v2009_v18 }
 0x184   : > { %888 = vmax.xlane.f32.xlu0 %v2806_v19 }
 0x187   : > { %v680_v20 = vpop.f32.mrf.mxu0 }
 0x188   : > { %v681_v22 = vadd.f32 %v2769_v26, %v680_v20 }
 0x189   : > { %v811_v23 = vpop.f32.mrf.mxu1 }
 0x18a   : > { %v2812_v24 = vadd.f32 %v2797_v10, %v811_v23  ;;  %v722_v25 = vpack.c.bf16 %v681_v22, %v679_v21 }
 0x18c   : > { %850 = vmatmul.bf16.gmra.mxu1 %v722_v25  ;;  %890 = vmax.xlane.f32.xlu1 %v2812_v24 }
 0x18f   : > { %v683_v27 = vpop.f32.mrf.mxu0 }
 0x190   : > { %v684_v31 = vadd.f32 %v2769_v26, %v683_v27 }
 0x191   : > { %v813_v28 = vpop.f32.mrf.mxu1 }
 0x192   : > { %v2816_v29 = vadd.f32 %v2797_v10, %v813_v28 }
 0x194   : > { %892 = vmax.xlane.f32.xlu1 %v2816_v29 }
 0x197   : > { %v685_v30 = vpop.f32.mrf.mxu0 }
 0x198   : > { %v686_v32 = vadd.f32 %v2769_v26, %v685_v30 }
 0x199   : > { %v816_v33 = vpop.f32.mrf.mxu1 }
 0x19a   : > { %v2822_v34 = vadd.f32 %v2797_v10, %v816_v33  ;;  %v723_v35 = vpack.c.bf16 %v686_v32, %v684_v31 }
 0x19c   : > { %855 = vmatmul.bf16.gmra.mxu1 %v723_v35  ;;  %894 = vmax.xlane.f32.xlu2 %v2822_v34 }
 0x19f   : > { %v688_v36 = vpop.f32.mrf.mxu0 }
 0x1a0   : > { %v689_v40 = vadd.f32 %v2769_v26, %v688_v36 }
 0x1a1   : > { %v818_v37 = vpop.f32.mrf.mxu1 }
 0x1a2   : > { %v2826_v38 = vadd.f32 %v2797_v10, %v818_v37 }
 0x1a4   : > { %896 = vmax.xlane.f32.xlu2 %v2826_v38 }
 0x1a7   : > { %v690_v39 = vpop.f32.mrf.mxu0 }
 0x1a8   : > { %v691_v41 = vadd.f32 %v2769_v26, %v690_v39 }
 0x1a9   : > { %v821_v42 = vpop.f32.mrf.mxu1 }
 0x1aa   : > { %v2832_v43 = vadd.f32 %v2797_v10, %v821_v42  ;;  %v724_v44 = vpack.c.bf16 %v691_v41, %v689_v40 }
 0x1ac   : > { %860 = vmatmul.bf16.gmra.mxu1 %v724_v44  ;;  %898 = vmax.xlane.f32.xlu0 %v2832_v43 }
 0x1af   : > { %v693_v45 = vpop.f32.mrf.mxu0 }
 0x1b0   : > { %v694_v49 = vadd.f32 %v2769_v26, %v693_v45 }
 0x1b1   : > { %v823_v46 = vpop.f32.mrf.mxu1 }
 0x1b2   : > { %v2836_v47 = vadd.f32 %v2797_v10, %v823_v46 }
 0x1b4   : > { %900 = vmax.xlane.f32.xlu1 %v2836_v47 }
 0x1b7   : > { %v695_v48 = vpop.f32.mrf.mxu0 }
 0x1b8   : > { %v696_v50 = vadd.f32 %v2769_v26, %v695_v48 }
 0x1b9   : > { %v826_v51 = vpop.f32.mrf.mxu1 }
 0x1ba   : > { %v725_v52 = vpack.c.bf16 %v696_v50, %v694_v49  ;;  %v2842_v53 = vadd.f32 %v2797_v10, %v826_v51 }
 0x1bc   : > { %865 = vmatmul.bf16.gmra.mxu1 %v725_v52  ;;  %902 = vmax.xlane.f32.xlu2 %v2842_v53 }
 0x1bf   : > { %v698_v54 = vpop.f32.mrf.mxu0 }
 0x1c0   : > { %v699_v59 = vadd.f32 %v2769_v26, %v698_v54 }
 0x1c1   : > { %v828_v55 = vpop.f32.mrf.mxu1 }
 0x1c2   : > { %v2846_v56 = vadd.f32 %v2797_v10, %v828_v55 }
 0x1c4   : > { %904 = vmax.xlane.f32.xlu0 %v2846_v56 }
 0x1c7   : > { %v700_v58 = vpop.f32.mrf.mxu0 }
 0x1c8   : > { %v701_v60 = vadd.f32 %v2769_v26, %v700_v58 }
 0x1c9   : > { %v831_v62 = vpop.f32.mrf.mxu1 }
 0x1ca   : > { %v726_v63 = vpack.c.bf16 %v701_v60, %v699_v59  ;;  %v2852_v0 = vadd.f32 %v2797_v10, %v831_v62 }
 0x1cc   : > { %870 = vmatmul.bf16.gmra.mxu1 %v726_v63  ;;  %906 = vmax.xlane.f32.xlu1 %v2852_v0 }
 0x1cf   : > { %v703_v2 = vpop.f32.mrf.mxu0 }
 0x1d0   : > { %v704_v8 = vadd.f32 %v2769_v26, %v703_v2 }
 0x1d1   : > { %v833_v4 = vpop.f32.mrf.mxu1 }
 0x1d2   : > { %v2856_v5 = vadd.f32 %v2797_v10, %v833_v4 }
 0x1d4   : > { %908 = vmax.xlane.f32.xlu2 %v2856_v5 }
 0x1d7   : > { %v705_v7 = vpop.f32.mrf.mxu0 }
 0x1d8   : > { %v706_v9 = vadd.f32 %v2769_v26, %v705_v7 }
 0x1d9   : > { %v836_v12 = vpop.f32.mrf.mxu1 }
 0x1da   : > { %v727_v13 = vpack.c.bf16 %v706_v9, %v704_v8  ;;  %v2862_v14 = vadd.f32 %v2797_v10, %v836_v12 }
 0x1dc   : > { %875 = vmatmul.bf16.gmra.mxu1 %v727_v13  ;;  %910 = vmax.xlane.f32.xlu0 %v2862_v14 }
 0x1df   : > { %v708_v17 = vpop.f32.mrf.mxu0 }
 0x1e0   : > { %v709_v23 = vadd.f32 %v2769_v26, %v708_v17 }
 0x1e1   : > { %v838_v20 = vpop.f32.mrf.mxu1 }
 0x1e2   : > { %v2866_v21 = vadd.f32 %v2797_v10, %v838_v20 }
 0x1e4   : > { %912 = vmax.xlane.f32.xlu1 %v2866_v21 }
 0x1e7   : > { %v710_v22 = vpop.f32.mrf.mxu0 }
 0x1e8   : > { %v711_v25 = vadd.f32 %v2769_v26, %v710_v22 }
 0x1e9   : > { %v841_v27 = vpop.f32.mrf.mxu1 }
 0x1ea   : > { %v728_v28 = vpack.c.bf16 %v711_v25, %v709_v23  ;;  %v2872_v30 = vadd.f32 %v2797_v10, %v841_v27 }
 0x1ec   : > { %880 = vmatmul.bf16.gmra.mxu1 %v728_v28  ;;  %914 = vmax.xlane.f32.xlu2 %v2872_v30 }
 0x1ef   : > { %v887_v31 = vpop.xlane.xlu0 %886 }
 0x1f0   : > { %v950_v35 = vsub.f32 %v2802_v15, %v887_v31 }
 0x1f1   : > { %v843_v32 = vpop.f32.mrf.mxu1 }
 0x1f2   : > { %v2876_v33 = vadd.f32 %v2797_v10, %v843_v32  ;;  %v982_v36 = vmul.f32 1.442695, %v950_v35 }
 0x1f4   : > { %916 = vmax.xlane.f32.xlu0 %v2876_v33  ;;  %2128 = vpow2.f32 %v982_v36 }
 0x1f7   : > { %v889_v37 = vpop.xlane.xlu0 %888 }
 0x1f8   : > { %v951_v26 = vsub.f32 %v2806_v19, %v889_v37 }
 0x1f9   : > { %v846_v39 = vpop.f32.mrf.mxu1 }
 0x1fa   : > { %v984_v40 = vmul.f32 1.442695, %v951_v26  ;;  %v2882_v41 = vadd.f32 %v2797_v10, %v846_v39  ;;  %v2129_v44 = vpop.eup %2128 }
 0x1fc   : > { %2130 = vpow2.f32 %v984_v40  ;;  %918 = vmax.xlane.f32.xlu1 %v2882_v41 }
 0x1ff   : > { %v891_v42 = vpop.xlane.xlu1 %890 }
 0x200   : > { %v952_v48 = vsub.f32 %v2812_v24, %v891_v42 }
 0x201   : > { %v848_v45 = vpop.f32.mrf.mxu1 }
 0x202   : > { %v2131_v46 = vpop.eup %2130  ;;  %v2886_v15 = vadd.f32 %v2797_v10, %v848_v45  ;;  %v986_v19 = vmul.f32 1.442695, %v952_v48 }
 0x203   : > { %v1110_v49 = vpack.c.bf16 %v2131_v46, %v2129_v44 }
 0x204   : > { %920 = vmax.xlane.f32.xlu2 %v2886_v15  ;;  %2132 = vpow2.f32 %v986_v19 }
 0x205   : > { %1198 = vmatmul.bf16.vlgmr.msra.gmra.mxu2 %v1110_v49 }
 0x207   : > { %v893_v50 = vpop.xlane.xlu1 %892 }
 0x208   : > { %v953_v51 = vsub.f32 %v2816_v29, %v893_v50 }
 0x209   : > { %v851_v52 = vpop.f32.mrf.mxu1 }
 0x20a   : > { %v988_v54 = vmul.f32 1.442695, %v953_v51  ;;  %v2892_v55 = vadd.f32 %v2797_v10, %v851_v52  ;;  %v2133_v24 = vpop.eup %2132 }
 0x20c   : > { %2134 = vpow2.f32 %v988_v54  ;;  %922 = vmax.xlane.f32.xlu0 %v2892_v55  ;;  %1046 = vadd.xlane.f32.xlu2 %v2129_v44 }
 0x20f   : > { %v895_v57 = vpop.xlane.xlu2 %894 }
 0x210   : > { %v954_v61 = vsub.f32 %v2822_v34, %v895_v57 }
 0x211   : > { %v853_v58 = vpop.f32.mrf.mxu1 }
 0x212   : > { %v2135_v59 = vpop.eup %2134  ;;  %v2896_v60 = vadd.f32 %v2797_v10, %v853_v58  ;;  %v990_v62 = vmul.f32 1.442695, %v954_v61 }
 0x213   : > { %v1111_v29 = vpack.c.bf16 %v2135_v59, %v2133_v24 }
 0x214   : > { %924 = vmax.xlane.f32.xlu1 %v2896_v60  ;;  %1048 = vadd.xlane.f32.xlu0 %v2131_v46  ;;  %2136 = vpow2.f32 %v990_v62 }
 0x215   : > { %1203 = vmatmul.bf16.gmra.mxu2 %v1111_v29 }
 0x217   : > { %v897_v63 = vpop.xlane.xlu2 %896 }
 0x218   : > { %v955_v1 = vsub.f32 %v2826_v38, %v897_v63 }
 0x219   : > { %v856_v2 = vpop.f32.mrf.mxu1 }
 0x21a   : > { %v992_v3 = vmul.f32 1.442695, %v955_v1  ;;  %v2902_v4 = vadd.f32 %v2797_v10, %v856_v2  ;;  %v2137_v6 = vpop.eup %2136  ;;  %v2023_v1 = vld [vmem:[#allocation10 + $0x30] sm:$0xff] }
 0x21c   : > { %2138 = vpow2.f32 %v992_v3  ;;  %926 = vmax.xlane.f32.xlu1 %v2902_v4  ;;  %1050 = vadd.xlane.f32.xlu0 %v2133_v24 }
 0x21f   : > { %v899_v34 = vpop.xlane.xlu0 %898 }
 0x220   : > { %v956_v11 = vsub.f32 %v2832_v43, %v899_v34 }
 0x221   : > { %v858_v7 = vpop.f32.mrf.mxu1 }
 0x222   : > { %v2139_v8 = vpop.eup %2138  ;;  %v2906_v9 = vadd.f32 %v2797_v10, %v858_v7  ;;  %v994_v12 = vmul.f32 1.442695, %v956_v11 }
 0x223   : > { %v1112_v38 = vpack.c.bf16 %v2139_v8, %v2137_v6 }
 0x224   : > { %1052 = vadd.xlane.f32.xlu1 %v2135_v59  ;;  %928 = vmax.xlane.f32.xlu2 %v2906_v9  ;;  %2140 = vpow2.f32 %v994_v12  ;;  %v2024_v59 = vld [vmem:[#allocation10 + $0x38] sm:$0xff] }
 0x225   : > { %1208 = vmatmul.bf16.gmra.mxu2 %v1112_v38  ;;  %1427 = vmatpush.bf16.msra.mxu3 %v2024_v59 }
 0x227   : > { %v901_v13 = vpop.xlane.xlu1 %900 }
 0x228   : > { %v957_v16 = vsub.f32 %v2836_v47, %v901_v13  ;;  %v2020_v13 = vld [vmem:[#allocation10 + $0x18] sm:$0xff] }
 0x229   : > { %v861_v17 = vpop.f32.mrf.mxu1  ;;  %1428 = vmatpush.bf16.msra.mxu3 %v2023_v1 }
 0x22a   : > { %v996_v18 = vmul.f32 1.442695, %v957_v16  ;;  %v2912_v20 = vadd.f32 %v2797_v10, %v861_v17  ;;  %v2141_v22 = vpop.eup %2140 }
 0x22c   : > { %2142 = vpow2.f32 %v996_v18  ;;  %1054 = vadd.xlane.f32.xlu1 %v2137_v6  ;;  %930 = vmax.xlane.f32.xlu2 %v2912_v20 }
 0x22f   : > { %v903_v43 = vpop.xlane.xlu2 %902 }
 0x230   : > { %v958_v28 = vsub.f32 %v2842_v53, %v903_v43 }
 0x231   : > { %v863_v23 = vpop.f32.mrf.mxu1 }
 0x232   : > { %v2143_v25 = vpop.eup %2142  ;;  %v2916_v27 = vadd.f32 %v2797_v10, %v863_v23  ;;  %v998_v31 = vmul.f32 1.442695, %v958_v28 }
 0x233   : > { %v1113_v47 = vpack.c.bf16 %v2143_v25, %v2141_v22 }
 0x234   : > { %1056 = vadd.xlane.f32.xlu2 %v2139_v8  ;;  %932 = vmax.xlane.f32.xlu0 %v2916_v27  ;;  %2144 = vpow2.f32 %v998_v31  ;;  %v2021_v8 = vld [vmem:[#allocation10 + $0x20] sm:$0xff] }
 0x235   : > { %1213 = vmatmul.bf16.gmra.mxu2 %v1113_v47 }
 0x237   : > { %v905_v32 = vpop.xlane.xlu0 %904 }
 0x238   : > { %v959_v35 = vsub.f32 %v2846_v56, %v905_v32 }
 0x239   : > { %v866_v36 = vpop.f32.mrf.mxu1 }
 0x23a   : > { %v1000_v37 = vmul.f32 1.442695, %v959_v35  ;;  %v2922_v26 = vadd.f32 %v2797_v10, %v866_v36  ;;  %v2145_v39 = vpop.eup %2144 }
 0x23c   : > { %2146 = vpow2.f32 %v1000_v37  ;;  %934 = vmax.xlane.f32.xlu0 %v2922_v26  ;;  %1058 = vadd.xlane.f32.xlu2 %v2141_v22  ;;  %v2019_v22 = vld [vmem:[#allocation10 + $0x10] sm:$0xff] }
 0x23f   : > { %v907_v53 = vpop.xlane.xlu1 %906 }
 0x240   : > { %v960_v45 = vsub.f32 %v2852_v0, %v907_v53 }
 0x241   : > { %v868_v40 = vpop.f32.mrf.mxu1 }
 0x242   : > { %v2147_v42 = vpop.eup %2146  ;;  %v2926_v44 = vadd.f32 %v2797_v10, %v868_v40  ;;  %v1002_v46 = vmul.f32 1.442695, %v960_v45 }
 0x243   : > { %v1114_v56 = vpack.c.bf16 %v2147_v42, %v2145_v39 }
 0x244   : > { %936 = vmax.xlane.f32.xlu1 %v2926_v44  ;;  %1060 = vadd.xlane.f32.xlu0 %v2143_v25  ;;  %2148 = vpow2.f32 %v1002_v46 }
 0x245   : > { %1218 = vmatmul.bf16.gmra.mxu2 %v1114_v56 }
 0x247   : > { %v909_v48 = vpop.xlane.xlu2 %908 }
 0x248   : > { %v961_v49 = vsub.f32 %v2856_v5, %v909_v48 }
 0x249   : > { %v871_v19 = vpop.f32.mrf.mxu1 }
 0x24a   : > { %v1004_v50 = vmul.f32 1.442695, %v961_v49  ;;  %v2932_v51 = vadd.f32 %v2797_v10, %v871_v19  ;;  %v2149_v52 = vpop.eup %2148 }
 0x24c   : > { %2150 = vpow2.f32 %v1004_v50  ;;  %938 = vmax.xlane.f32.xlu1 %v2932_v51  ;;  %1062 = vadd.xlane.f32.xlu0 %v2145_v39 }
 0x24f   : > { %v911_v0 = vpop.xlane.xlu0 %910 }
 0x250   : > { %v962_v58 = vsub.f32 %v2862_v14, %v911_v0  ;;  %v2022_v14 = vld [vmem:[#allocation10 + $0x28] sm:$0xff] }
 0x251   : > { %v873_v54 = vpop.f32.mrf.mxu1  ;;  %1429 = vmatpush.bf16.msra.mxu3 %v2022_v14 }
 0x252   : > { %v2151_v57 = vpop.eup %2150  ;;  %v2936_v24 = vadd.f32 %v2797_v10, %v873_v54  ;;  %v1006_v61 = vmul.f32 1.442695, %v962_v58 }
 0x253   : > { %v1115_v5 = vpack.c.bf16 %v2151_v57, %v2149_v52 }
 0x254   : > { %940 = vmax.xlane.f32.xlu2 %v2936_v24  ;;  %1064 = vadd.xlane.f32.xlu1 %v2147_v42  ;;  %2152 = vpow2.f32 %v1006_v61 }
 0x255   : > { %1223 = vmatmul.bf16.gmra.mxu2 %v1115_v5  ;;  %1430 = vmatpush.bf16.msra.mxu3 %v2021_v8 }
 0x257   : > { %v913_v29 = vpop.xlane.xlu1 %912 }
 0x258   : > { %v963_v62 = vsub.f32 %v2866_v21, %v913_v29 }
 0x259   : > { %v876_v63 = vpop.f32.mrf.mxu1  ;;  %1431 = vmatpush.bf16.msra.mxu3 %v2020_v13 }
 0x25a   : > { %v1008_v2 = vmul.f32 1.442695, %v963_v62  ;;  %v2942_v3 = vadd.f32 %v2797_v10, %v876_v63  ;;  %v2153_v6 = vpop.eup %2152 }
 0x25c   : > { %2154 = vpow2.f32 %v1008_v2  ;;  %942 = vmax.xlane.f32.xlu2 %v2942_v3  ;;  %1066 = vadd.xlane.f32.xlu1 %v2149_v52 }
 0x25d   : > { %1432 = vmatpush.bf16.msra.mxu3 %v2019_v22 }
 0x25f   : > { %v915_v34 = vpop.xlane.xlu2 %914 }
 0x260   : > { %v964_v38 = vsub.f32 %v2872_v30, %v915_v34  ;;  %v2018_v30 = vld [vmem:[#allocation10 + $0x8] sm:$0xff] }
 0x261   : > { %v878_v7 = vpop.f32.mrf.mxu1  ;;  %1433 = vmatpush.bf16.msra.mxu3 %v2018_v30 }
 0x262   : > { %v2155_v11 = vpop.eup %2154  ;;  %v2946_v21 = vadd.f32 %v2797_v10, %v878_v7  ;;  %v1010_v16 = vmul.f32 1.442695, %v964_v38 }
 0x263   : > { %v1116_v12 = vpack.c.bf16 %v2155_v11, %v2153_v6 }
 0x264   : > { %944 = vmax.xlane.f32.xlu0 %v2946_v21  ;;  %1068 = vadd.xlane.f32.xlu2 %v2151_v57  ;;  %2156 = vpow2.f32 %v1010_v16 }
 0x265   : > { %1228 = vmatmul.bf16.gmra.mxu2 %v1116_v12 }
 0x267   : > { %v917_v17 = vpop.xlane.xlu0 %916 }
 0x268   : > { %v965_v18 = vsub.f32 %v2876_v33, %v917_v17  ;;  %v2017_v33 = vld [vmem:[#allocation10] sm:$0xff] }
 0x269   : > { %v881_v43 = vpop.f32.mrf.mxu1  ;;  %1434 = vmatpush.bf16.msra.mxu3 %v2017_v33 }
 0x26a   : > { %v1012_v23 = vmul.f32 1.442695, %v965_v18  ;;  %v2952_v25 = vadd.f32 %v2797_v10, %v881_v43  ;;  %v2157_v31 = vpop.eup %2156 }
 0x26c   : > { %2158 = vpow2.f32 %v1012_v23  ;;  %946 = vmax.xlane.f32.xlu0 %v2952_v25  ;;  %1070 = vadd.xlane.f32.xlu2 %v2153_v6 }
 0x26f   : > { %v919_v28 = vpop.xlane.xlu1 %918 }
 0x270   : > { %v966_v47 = vsub.f32 %v2882_v41, %v919_v28 }
 0x271   : > { %v883_v32 = vpop.f32.mrf.mxu1 }
 0x272   : > { %v2159_v35 = vpop.eup %2158  ;;  %v1014_v36 = vmul.f32 1.442695, %v966_v47  ;;  %v2957_v37 = vadd.f32 %v2797_v10, %v883_v32 }
 0x273   : > { %v1117_v53 = vpack.c.bf16 %v2159_v35, %v2157_v31 }
 0x274   : > { %2160 = vpow2.f32 %v1014_v36  ;;  %1072 = vadd.xlane.f32.xlu0 %v2155_v11  ;;  %948 = vmax.xlane.f32.xlu1 %v2957_v37 }
 0x275   : > { %1076 = vadd.xlane.f32.xlu2 %v2159_v35  ;;  %1233 = vmatmul.bf16.gmra.mxu2 %v1117_v53 }
 0x277   : > { %v921_v39 = vpop.xlane.xlu2 %920 }
 0x278   : > { %v967_v40 = vsub.f32 %v2886_v15, %v921_v39 }
 0x27a   : > { %v2161_v41 = vpop.eup %2160  ;;  %v1016_v42 = vmul.f32 1.442695, %v967_v40 }
 0x27c   : > { %2162 = vpow2.f32 %v1016_v42  ;;  %1078 = vadd.xlane.f32.xlu0 %v2161_v41  ;;  %1074 = vadd.xlane.f32.xlu1 %v2157_v31 }
 0x27f   : > { %v923_v45 = vpop.xlane.xlu0 %922  ;;  %v1047_v49 = vpop.xlane.xlu2 %1046 }
 0x280   : > { %v968_v10 = vsub.f32 %v2892_v55, %v923_v45 }
 0x282   : > { %v2163_v56 = vpop.eup %2162  ;;  %v1018_v46 = vmul.f32 1.442695, %v968_v10 }
 0x283   : > { %v1118_v48 = vpack.c.bf16 %v2163_v56, %v2161_v41 }
 0x284   : > { %2164 = vpow2.f32 %v1018_v46  ;;  %1080 = vadd.xlane.f32.xlu1 %v2163_v56 }
 0x285   : > { %1238 = vmatmul.bf16.gmra.mxu2 %v1118_v48  ;;  %2166 = vrcp.f32 %v1047_v49 }
 0x287   : > { %v925_v19 = vpop.xlane.xlu1 %924  ;;  %v1049_v50 = vpop.xlane.xlu0 %1048 }
 0x288   : > { %v969_v0 = vsub.f32 %v2896_v60, %v925_v19  ;;  %v1199_v15 = vpop.f32.mrf.mxu2  ;;  %2168 = vrcp.f32 %v1049_v50 }
 0x28a   : > { %v2165_v52 = vpop.eup %2164  ;;  %v1020_v54 = vmul.f32 1.442695, %v969_v0 }
 0x28b   : > { %1082 = vadd.xlane.f32.xlu2 %v2165_v52  ;;  %v2167_v57 = vpop.eup %2166 }
 0x28c   : > { %2170 = vpow2.f32 %v1020_v54  ;;  %v1311_v61 = vmul.f32 %v2167_v57, %v1199_v15 }
 0x28e   : > { %v2169_v58 = vpop.eup %2168 }
 0x28f   : > { %v927_v55 = vpop.xlane.xlu1 %926  ;;  %v1051_v2 = vpop.xlane.xlu0 %1050 }
 0x290   : > { %v970_v5 = vsub.f32 %v2902_v4, %v927_v55  ;;  %v1201_v59 = vpop.f32.mrf.mxu2 }
 0x291   : > { %v1312_v29 = vmul.f32 %v2169_v58, %v1201_v59 }
 0x292   : > { %v2171_v62 = vpop.eup %2170  ;;  %v1022_v63 = vmul.f32 1.442695, %v970_v5 }
 0x293   : > { %1084 = vadd.xlane.f32.xlu0 %v2171_v62  ;;  %v1119_v1 = vpack.c.bf16 %v2171_v62, %v2165_v52  ;;  %v1343_v60 = vpack.c.bf16 %v1312_v29, %v1311_v61 }
 0x294   : > { %2172 = vpow2.f32 %v1022_v63 }
 0x295   : > { %1243 = vmatmul.bf16.gmra.mxu2 %v1119_v1  ;;  %1435 = vmatmul.bf16.vlgmr.msra.gmra.mxu3 %v1343_v60  ;;  %2174 = vrcp.f32 %v1051_v2 }
 0x297   : > { %v1053_v14 = vpop.xlane.xlu1 %1052  ;;  %v929_v34 = vpop.xlane.xlu2 %928 }
 0x298   : > { %v971_v6 = vsub.f32 %v2906_v9, %v929_v34  ;;  %v1204_v7 = vpop.f32.mrf.mxu2  ;;  %2176 = vrcp.f32 %v1053_v14 }
 0x29a   : > { %v2173_v8 = vpop.eup %2172  ;;  %v1024_v4 = vmul.f32 1.442695, %v971_v6 }
 0x29b   : > { %1086 = vadd.xlane.f32.xlu1 %v2173_v8  ;;  %v2175_v11 = vpop.eup %2174 }
 0x29c   : > { %2178 = vpow2.f32 %v1024_v4  ;;  %v1313_v17 = vmul.f32 %v2175_v11, %v1204_v7 }
 0x29e   : > { %v2177_v12 = vpop.eup %2176 }
 0x29f   : > { %v931_v38 = vpop.xlane.xlu2 %930  ;;  %v1055_v30 = vpop.xlane.xlu1 %1054 }
 0x2a0   : > { %v972_v13 = vsub.f32 %v2912_v20, %v931_v38  ;;  %v1206_v16 = vpop.f32.mrf.mxu2 }
 0x2a1   : > { %v1314_v18 = vmul.f32 %v2177_v12, %v1206_v16 }
 0x2a2   : > { %v2179_v43 = vpop.eup %2178  ;;  %v1026_v22 = vmul.f32 1.442695, %v972_v13 }
 0x2a3   : > { %1088 = vadd.xlane.f32.xlu2 %v2179_v43  ;;  %v1120_v23 = vpack.c.bf16 %v2179_v43, %v2173_v8  ;;  %v1344_v9 = vpack.c.bf16 %v1314_v18, %v1313_v17 }
 0x2a4   : > { %2180 = vpow2.f32 %v1026_v22 }
 0x2a5   : > { %1248 = vmatmul.bf16.gmra.mxu2 %v1120_v23  ;;  %1440 = vmatmul.bf16.gmra.mxu3 %v1344_v9  ;;  %2182 = vrcp.f32 %v1055_v30 }
 0x2a7   : > { %v1057_v28 = vpop.xlane.xlu2 %1056  ;;  %v933_v47 = vpop.xlane.xlu0 %932 }
 0x2a8   : > { %v973_v31 = vsub.f32 %v2916_v27, %v933_v47  ;;  %v1209_v32 = vpop.f32.mrf.mxu2  ;;  %2184 = vrcp.f32 %v1057_v28 }
 0x2aa   : > { %v2181_v33 = vpop.eup %2180  ;;  %v1028_v20 = vmul.f32 1.442695, %v973_v31 }
 0x2ab   : > { %1090 = vadd.xlane.f32.xlu0 %v2181_v33  ;;  %v2183_v35 = vpop.eup %2182 }
 0x2ac   : > { %2186 = vpow2.f32 %v1028_v20  ;;  %v1315_v41 = vmul.f32 %v2183_v35, %v1209_v32 }
 0x2ae   : > { %v2185_v53 = vpop.eup %2184 }
 0x2af   : > { %v935_v36 = vpop.xlane.xlu0 %934  ;;  %v1059_v46 = vpop.xlane.xlu2 %1058 }
 0x2b0   : > { %v974_v39 = vsub.f32 %v2922_v26, %v935_v36  ;;  %v1211_v40 = vpop.f32.mrf.mxu2 }
 0x2b1   : > { %v1316_v42 = vmul.f32 %v2185_v53, %v1211_v40 }
 0x2b2   : > { %v2187_v45 = vpop.eup %2186  ;;  %v1030_v10 = vmul.f32 1.442695, %v974_v39 }
 0x2b3   : > { %1092 = vadd.xlane.f32.xlu1 %v2187_v45  ;;  %v1121_v56 = vpack.c.bf16 %v2187_v45, %v2181_v33  ;;  %v1345_v27 = vpack.c.bf16 %v1316_v42, %v1315_v41 }
 0x2b4   : > { %2188 = vpow2.f32 %v1030_v10 }
 0x2b5   : > { %1253 = vmatmul.bf16.gmra.mxu2 %v1121_v56  ;;  %1445 = vmatmul.bf16.gmra.mxu3 %v1345_v27  ;;  %2190 = vrcp.f32 %v1059_v46 }
 0x2b7   : > { %v937_v48 = vpop.xlane.xlu1 %936  ;;  %v1061_v49 = vpop.xlane.xlu0 %1060 }
 0x2b8   : > { %v975_v19 = vsub.f32 %v2926_v44, %v937_v48  ;;  %v1214_v50 = vpop.f32.mrf.mxu2  ;;  %2192 = vrcp.f32 %v1061_v49 }
 0x2ba   : > { %v2189_v0 = vpop.eup %2188  ;;  %v1032_v26 = vmul.f32 1.442695, %v975_v19 }
 0x2bb   : > { %1094 = vadd.xlane.f32.xlu2 %v2189_v0  ;;  %v2191_v15 = vpop.eup %2190 }
 0x2bc   : > { %2194 = vpow2.f32 %v1032_v26  ;;  %v1317_v58 = vmul.f32 %v2191_v15, %v1214_v50 }
 0x2be   : > { %v2193_v54 = vpop.eup %2192 }
 0x2bf   : > { %v939_v52 = vpop.xlane.xlu1 %938  ;;  %v1063_v62 = vpop.xlane.xlu0 %1062 }
 0x2c0   : > { %v976_v57 = vsub.f32 %v2932_v51, %v939_v52  ;;  %v1216_v55 = vpop.f32.mrf.mxu2 }
 0x2c1   : > { %v1318_v5 = vmul.f32 %v2193_v54, %v1216_v55 }
 0x2c2   : > { %v2195_v59 = vpop.eup %2194  ;;  %v1034_v61 = vmul.f32 1.442695, %v976_v57 }
 0x2c3   : > { %1096 = vadd.xlane.f32.xlu0 %v2195_v59  ;;  %v1122_v29 = vpack.c.bf16 %v2195_v59, %v2189_v0  ;;  %v1346_v44 = vpack.c.bf16 %v1318_v5, %v1317_v58 }
 0x2c4   : > { %2196 = vpow2.f32 %v1034_v61 }
 0x2c5   : > { %1258 = vmatmul.bf16.gmra.mxu2 %v1122_v29  ;;  %1450 = vmatmul.bf16.gmra.mxu3 %v1346_v44  ;;  %2198 = vrcp.f32 %v1063_v62 }
 0x2c7   : > { %v941_v63 = vpop.xlane.xlu2 %940  ;;  %v1065_v1 = vpop.xlane.xlu1 %1064 }
 0x2c8   : > { %v977_v60 = vsub.f32 %v2936_v24, %v941_v63  ;;  %v1219_v2 = vpop.f32.mrf.mxu2  ;;  %2200 = vrcp.f32 %v1065_v1 }
 0x2ca   : > { %v2197_v14 = vpop.eup %2196  ;;  %v1036_v51 = vmul.f32 1.442695, %v977_v60 }
 0x2cb   : > { %1098 = vadd.xlane.f32.xlu1 %v2197_v14  ;;  %v2199_v34 = vpop.eup %2198 }
 0x2cc   : > { %2202 = vpow2.f32 %v1036_v51  ;;  %v1319_v11 = vmul.f32 %v2199_v34, %v1219_v2  ;;  %v2979_v51 = vld [vmem:[%s3137_s6] ss:$0 sm:$0xff] }
 0x2ce   : > { %v2201_v7 = vpop.eup %2200 }
 0x2cf   : > { %v943_v6 = vpop.xlane.xlu2 %942  ;;  %v1067_v17 = vpop.xlane.xlu1 %1066 }
 0x2d0   : > { %v978_v8 = vsub.f32 %v2942_v3, %v943_v6  ;;  %v1221_v4 = vpop.f32.mrf.mxu2 }
 0x2d1   : > { %v1320_v38 = vmul.f32 %v2201_v7, %v1221_v4 }
 0x2d2   : > { %v2203_v12 = vpop.eup %2202  ;;  %v1038_v13 = vmul.f32 1.442695, %v978_v8 }
 0x2d3   : > { %1100 = vadd.xlane.f32.xlu2 %v2203_v12  ;;  %v1123_v16 = vpack.c.bf16 %v2203_v12, %v2197_v14  ;;  %v1347_v24 = vpack.c.bf16 %v1320_v38, %v1319_v11  ;;  %v428_v14 = vld [vmem:[%s2735_s12] sm:$0xff]  }
 0x2d4   : > { %2204 = vpow2.f32 %v1038_v13  ;;  %v1516_v7 = vunpack.c.l.bf16 %v428_v14  ;;  %v1517_v13 = vunpack.c.h.bf16 %v428_v14 }
 0x2d5   : > { %1263 = vmatmul.bf16.gmra.mxu2 %v1123_v16  ;;  %1455 = vmatmul.bf16.gmra.mxu3 %v1347_v24  ;;  %2206 = vrcp.f32 %v1067_v17 }
 0x2d7   : > { %v1069_v18 = vpop.xlane.xlu2 %1068  ;;  %v945_v43 = vpop.xlane.xlu0 %944 }
 0x2d8   : > { %v979_v22 = vsub.f32 %v2946_v21, %v945_v43  ;;  %v1224_v23 = vpop.f32.mrf.mxu2  ;;  %2208 = vrcp.f32 %v1069_v18 }
 0x2da   : > { %v2205_v9 = vpop.eup %2204  ;;  %v1040_v3 = vmul.f32 1.442695, %v979_v22 }
 0x2db   : > { %1102 = vadd.xlane.f32.xlu0 %v2205_v9  ;;  %v2207_v30 = vpop.eup %2206 }
 0x2dc   : > { %2210 = vpow2.f32 %v1040_v3  ;;  %v1321_v33 = vmul.f32 %v2207_v30, %v1224_v23  ;;  %v430_v3 = vld [vmem:[%s2735_s12 + $0x8] sm:$0xff]  }
 0x2de   : > { %v2209_v47 = vpop.eup %2208 }
 0x2df   : > { %v947_v28 = vpop.xlane.xlu0 %946  ;;  %v1071_v39 = vpop.xlane.xlu2 %1070 }
 0x2e0   : > { %v980_v31 = vsub.f32 %v2952_v25, %v947_v28  ;;  %v1226_v32 = vpop.f32.mrf.mxu2 }
 0x2e1   : > { %v1322_v20 = vmul.f32 %v2209_v47, %v1226_v32  ;;  %v1518_v47 = vunpack.c.l.bf16 %v430_v3 }
 0x2e2   : > { %v2211_v35 = vpop.eup %2210  ;;  %v1042_v36 = vmul.f32 1.442695, %v980_v31 }
 0x2e3   : > { %1104 = vadd.xlane.f32.xlu1 %v2211_v35  ;;  %v1124_v53 = vpack.c.bf16 %v2211_v35, %v2205_v9  ;;  %v1348_v21 = vpack.c.bf16 %v1322_v20, %v1321_v33 }
 0x2e4   : > { %2212 = vpow2.f32 %v1042_v36  ;;  %v1519_v36 = vunpack.c.h.bf16 %v430_v3 }
 0x2e5   : > { %1268 = vmatmul.bf16.gmra.mxu2 %v1124_v53  ;;  %1460 = vmatmul.bf16.gmra.mxu3 %v1348_v21  ;;  %2214 = vrcp.f32 %v1071_v39 }
 0x2e7   : > { %v949_v40 = vpop.xlane.xlu1 %948  ;;  %v1073_v41 = vpop.xlane.xlu0 %1072 }
 0x2e8   : > { %v981_v42 = vsub.f32 %v2957_v37, %v949_v40  ;;  %v1229_v45 = vpop.f32.mrf.mxu2  ;;  %2216 = vrcp.f32 %v1073_v41  ;;  %v1077_v26 = vpop.xlane.xlu2 %1076 }
 0x2ea   : > { %v2213_v10 = vpop.eup %2212  ;;  %v1044_v25 = vmul.f32 1.442695, %v981_v42 }
 0x2eb   : > { %1106 = vadd.xlane.f32.xlu2 %v2213_v10  ;;  %v2215_v56 = vpop.eup %2214 }
 0x2ec   : > { %2218 = vpow2.f32 %v1044_v25  ;;  %v1323_v48 = vmul.f32 %v2215_v56, %v1229_v45  ;;  %v432_v25 = vld [vmem:[%s2735_s12 + $0x10] sm:$0xff]  }
 0x2ed   : > { %2220 = vrcp.f32 %v1077_v26  ;;  %v1521_v26 = vunpack.c.h.bf16 %v432_v25 }
 0x2ee   : > { %v2217_v27 = vpop.eup %2216 }
 0x2ef   : > { %v1075_v37 = vpop.xlane.xlu1 %1074  ;;  %v1079_v59 = vpop.xlane.xlu0 %1078 }
 0x2f0   : > { %v1231_v46 = vpop.f32.mrf.mxu2  ;;  %2222 = vrcp.f32 %v1075_v37 }
 0x2f1   : > { %v1324_v49 = vmul.f32 %v2217_v27, %v1231_v46  ;;  %2224 = vrcp.f32 %v1079_v59  ;;  %v1520_v46 = vunpack.c.l.bf16 %v432_v25  ;;  %v434_v59 = vld [vmem:[%s2735_s12 + $0x18] sm:$0xff]  }
 0x2f2   : > { %v2219_v19 = vpop.eup %2218  ;;  %v1523_v14 = vunpack.c.h.bf16 %v434_v59 }
 0x2f3   : > { %1108 = vadd.xlane.f32.xlu0 %v2219_v19  ;;  %v1125_v50 = vpack.c.bf16 %v2219_v19, %v2213_v10  ;;  %v1349_v0 = vpack.c.bf16 %v1324_v49, %v1323_v48  ;;  %v2221_v52 = vpop.eup %2220 }
 0x2f5   : > { %1273 = vmatmul.bf16.gmra.mxu2 %v1125_v50  ;;  %1465 = vmatmul.bf16.gmra.mxu3 %v1349_v0 }
 0x2f6   : > { %v2223_v54 = vpop.eup %2222 }
 0x2f7   : > { %v1081_v61 = vpop.xlane.xlu1 %1080  ;;  %v2225_v44 = vpop.eup %2224 }
 0x2f8   : > { %v1234_v15 = vpop.f32.mrf.mxu2  ;;  %2226 = vrcp.f32 %v1081_v61 }
 0x2f9   : > { %v1325_v55 = vmul.f32 %v2223_v54, %v1234_v15 }
 0x2fe   : > { %v2227_v62 = vpop.eup %2226  ;;  %v1083_v34 = vpop.xlane.xlu2 %1082 }
 0x2ff   : > { %2228 = vrcp.f32 %v1083_v34 }
 0x300   : > { %v1236_v57 = vpop.f32.mrf.mxu2 }
 0x301   : > { %v1326_v58 = vmul.f32 %v2221_v52, %v1236_v57 }
 0x303   : > { %v1350_v5 = vpack.c.bf16 %v1326_v58, %v1325_v55 }
 0x305   : > { %1470 = vmatmul.bf16.gmra.mxu3 %v1350_v5  ;;  %v2229_v12 = vpop.eup %2228 }
 0x306   : > { %v1085_v6 = vpop.xlane.xlu0 %1084 }
 0x307   : > { %2230 = vrcp.f32 %v1085_v6 }
 0x308   : > { %v1239_v29 = vpop.f32.mrf.mxu2 }
 0x309   : > { %v1327_v1 = vmul.f32 %v2225_v44, %v1239_v29  ;;  %v1522_v44 = vunpack.c.l.bf16 %v434_v59 }
 0x30d   : > { %v2231_v16 = vpop.eup %2230 }
 0x30e   : > { %v1087_v30 = vpop.xlane.xlu1 %1086 }
 0x30f   : > { %2232 = vrcp.f32 %v1087_v30 }
 0x310   : > { %v1241_v63 = vpop.f32.mrf.mxu2 }
 0x311   : > { %v1328_v60 = vmul.f32 %v2227_v62, %v1241_v63 }
 0x313   : > { %v1351_v2 = vpack.c.bf16 %v1328_v60, %v1327_v1 }
 0x315   : > { %1475 = vmatmul.bf16.gmra.mxu3 %v1351_v2  ;;  %v2233_v35 = vpop.eup %2232 }
 0x316   : > { %v1089_v28 = vpop.xlane.xlu2 %1088 }
 0x317   : > { %2234 = vrcp.f32 %v1089_v28 }
 0x318   : > { %v1244_v8 = vpop.f32.mrf.mxu2  ;;  %v1436_v4 = vpop.f32.mrf.mxu3 }
 0x319   : > { %v1437_v11 = vadd.f32 %v2979_v51, %v1436_v4  ;;  %v1329_v18 = vmul.f32 %v2229_v12, %v1244_v8 }
 0x31b   : > { %v1548_v38 = vadd.f32 %v1516_v7, %v1437_v11 }
 0x31d   : > { %1580 = vst [vmem:[%s2983_s22] sm:$0xff] %v1548_v38  ;;  %v2235_v53 = vpop.eup %2234 }
 0x31e   : > { %v1091_v56 = vpop.xlane.xlu0 %1090 }
 0x31f   : > { %2236 = vrcp.f32 %v1091_v56 }
 0x320   : > { %v1246_v24 = vpop.f32.mrf.mxu2  ;;  %v1438_v17 = vpop.f32.mrf.mxu3 }
 0x321   : > { %v1330_v43 = vmul.f32 %v2231_v16, %v1246_v24  ;;  %v1439_v22 = vadd.f32 %v2979_v51, %v1438_v17 }
 0x323   : > { %v1549_v23 = vadd.f32 %v1517_v13, %v1439_v22  ;;  %v1352_v9 = vpack.c.bf16 %v1330_v43, %v1329_v18  ;;  %v436_v13 = vld [vmem:[%s2735_s12 + $0x20] sm:$0xff]  }
 0x324   : > { %v1524_v17 = vunpack.c.l.bf16 %v436_v13  ;;  %v1525_v3 = vunpack.c.h.bf16 %v436_v13  ;;  %v444_v13 = vld [vmem:[%s2735_s12 + $0x40] sm:$0xff]  }
 0x325   : > { %1581 = vst [vmem:[%s2983_s22 + $0x8] sm:$0xff] %v1549_v23  ;;  %1480 = vmatmul.bf16.gmra.mxu3 %v1352_v9  ;;  %v2237_v0 = vpop.eup %2236 }
 0x326   : > { %v1093_v27 = vpop.xlane.xlu1 %1092 }
 0x327   : > { %2238 = vrcp.f32 %v1093_v27 }
 0x328   : > { %v1249_v31 = vpop.f32.mrf.mxu2  ;;  %v1441_v32 = vpop.f32.mrf.mxu3 }
 0x329   : > { %v1442_v33 = vadd.f32 %v2979_v51, %v1441_v32  ;;  %v1331_v40 = vmul.f32 %v2233_v35, %v1249_v31 }
 0x32b   : > { %v1550_v20 = vadd.f32 %v1518_v47, %v1442_v33 }
 0x32d   : > { %1582 = vst [vmem:[%s2983_s22 + $0x10] sm:$0xff] %v1550_v20  ;;  %v2239_v37 = vpop.eup %2238 }
 0x32e   : > { %v1095_v61 = vpop.xlane.xlu2 %1094 }
 0x32f   : > { %2240 = vrcp.f32 %v1095_v61 }
 0x330   : > { %v1251_v21 = vpop.f32.mrf.mxu2  ;;  %v1443_v39 = vpop.f32.mrf.mxu3 }
 0x331   : > { %v1332_v41 = vmul.f32 %v2235_v53, %v1251_v21  ;;  %v1444_v42 = vadd.f32 %v2979_v51, %v1443_v39 }
 0x333   : > { %v1551_v45 = vadd.f32 %v1519_v36, %v1444_v42  ;;  %v1353_v10 = vpack.c.bf16 %v1332_v41, %v1331_v40  ;;  %v438_v36 = vld [vmem:[%s2735_s12 + $0x28] sm:$0xff]  }
 0x334   : > { %v1526_v39 = vunpack.c.l.bf16 %v438_v36  ;;  %v1527_v25 = vunpack.c.h.bf16 %v438_v36  ;;  %v448_v36 = vld [vmem:[%s2735_s12 + $0x50] sm:$0xff]  }
 0x335   : > { %1583 = vst [vmem:[%s2983_s22 + $0x18] sm:$0xff] %v1551_v45  ;;  %1485 = vmatmul.bf16.gmra.mxu3 %v1353_v10  ;;  %v2241_v2 = vpop.eup %2240 }
 0x336   : > { %v1097_v29 = vpop.xlane.xlu0 %1096 }
 0x337   : > { %2242 = vrcp.f32 %v1097_v29 }
 0x338   : > { %v1254_v48 = vpop.f32.mrf.mxu2  ;;  %v1446_v49 = vpop.f32.mrf.mxu3 }
 0x339   : > { %v1447_v19 = vadd.f32 %v2979_v51, %v1446_v49  ;;  %v1333_v54 = vmul.f32 %v2237_v0, %v1254_v48 }
 0x33b   : > { %v1552_v50 = vadd.f32 %v1520_v46, %v1447_v19 }
 0x33d   : > { %1584 = vst [vmem:[%s2983_s22 + $0x20] sm:$0xff] %v1552_v50  ;;  %v2243_v34 = vpop.eup %2242 }
 0x33e   : > { %v1099_v16 = vpop.xlane.xlu1 %1098 }
 0x33f   : > { %2244 = vrcp.f32 %v1099_v16  ;;  %v1532_v16 = vunpack.c.l.bf16 %v444_v13 }
 0x340   : > { %v1256_v15 = vpop.f32.mrf.mxu2  ;;  %v1448_v52 = vpop.f32.mrf.mxu3 }
 0x341   : > { %v1334_v57 = vmul.f32 %v2239_v37, %v1256_v15  ;;  %v1449_v55 = vadd.f32 %v2979_v51, %v1448_v52 }
 0x343   : > { %v1553_v58 = vadd.f32 %v1521_v26, %v1449_v55  ;;  %v1354_v5 = vpack.c.bf16 %v1334_v57, %v1333_v54  ;;  %v440_v26 = vld [vmem:[%s2735_s12 + $0x30] sm:$0xff]  }
 0x344   : > { %v1528_v52 = vunpack.c.l.bf16 %v440_v26  ;;  %v1529_v59 = vunpack.c.h.bf16 %v440_v26  ;;  %v452_v26 = vld [vmem:[%s2735_s12 + $0x60] sm:$0xff]  }
 0x345   : > { %1585 = vst [vmem:[%s2983_s22 + $0x28] sm:$0xff] %v1553_v58  ;;  %1490 = vmatmul.bf16.gmra.mxu3 %v1354_v5  ;;  %v2245_v9 = vpop.eup %2244 }
 0x346   : > { %v1101_v24 = vpop.xlane.xlu2 %1100 }
 0x347   : > { %2246 = vrcp.f32 %v1101_v24 }
 0x348   : > { %v1259_v62 = vpop.f32.mrf.mxu2  ;;  %v1451_v63 = vpop.f32.mrf.mxu3 }
 0x349   : > { %v1452_v1 = vadd.f32 %v2979_v51, %v1451_v63  ;;  %v1335_v8 = vmul.f32 %v2241_v2, %v1259_v62 }
 0x34b   : > { %v1554_v60 = vadd.f32 %v1522_v44, %v1452_v1 }
 0x34d   : > { %1586 = vst [vmem:[%s2983_s22 + $0x30] sm:$0xff] %v1554_v60  ;;  %v2247_v30 = vpop.eup %2246 }
 0x34e   : > { %v1103_v53 = vpop.xlane.xlu0 %1102 }
 0x34f   : > { %2248 = vrcp.f32 %v1103_v53  ;;  %v1536_v53 = vunpack.c.l.bf16 %v448_v36 }
 0x350   : > { %v1261_v6 = vpop.f32.mrf.mxu2  ;;  %v1453_v7 = vpop.f32.mrf.mxu3 }
 0x351   : > { %v1336_v4 = vmul.f32 %v2243_v34, %v1261_v6  ;;  %v1454_v11 = vadd.f32 %v2979_v51, %v1453_v7 }
 0x353   : > { %v1355_v38 = vpack.c.bf16 %v1336_v4, %v1335_v8  ;;  %v1555_v12 = vadd.f32 %v1523_v14, %v1454_v11  ;;  %v442_v14 = vld [vmem:[%s2735_s12 + $0x38] sm:$0xff]  }
 0x354   : > { %v1530_v34 = vunpack.c.l.bf16 %v442_v14  ;;  %v1531_v4 = vunpack.c.h.bf16 %v442_v14  ;;  %v456_v14 = vld [vmem:[%s2735_s12 + $0x70] sm:$0xff]  }
 0x355   : > { %1587 = vst [vmem:[%s2983_s22 + $0x38] sm:$0xff] %v1555_v12  ;;  %1495 = vmatmul.bf16.gmra.mxu3 %v1355_v38  ;;  %v2249_v10 = vpop.eup %2248 }
 0x356   : > { %v1105_v21 = vpop.xlane.xlu1 %1104 }
 0x357   : > { %2250 = vrcp.f32 %v1105_v21 }
 0x358   : > { %v1264_v18 = vpop.f32.mrf.mxu2  ;;  %v1456_v43 = vpop.f32.mrf.mxu3 }
 0x359   : > { %v1457_v22 = vadd.f32 %v2979_v51, %v1456_v43  ;;  %v1337_v31 = vmul.f32 %v2245_v9, %v1264_v18  ;;  %v1533_v43 = vunpack.c.h.bf16 %v444_v13  ;;  %v458_v13 = vld [vmem:[%s2735_s12 + $0x78] sm:$0xff]  }
 0x35b   : > { %v1556_v23 = vadd.f32 %v1524_v17, %v1457_v22 }
 0x35d   : > { %1588 = vst [vmem:[%s2983_s22 + $0x40] sm:$0xff] %v1556_v23  ;;  %v2251_v56 = vpop.eup %2250 }
 0x35e   : > { %v1107_v37 = vpop.xlane.xlu2 %1106 }
 0x35f   : > { %2252 = vrcp.f32 %v1107_v37  ;;  %v1540_v37 = vunpack.c.l.bf16 %v452_v26 }
 0x360   : > { %v1266_v28 = vpop.f32.mrf.mxu2  ;;  %v1458_v47 = vpop.f32.mrf.mxu3 }
 0x361   : > { %v1338_v32 = vmul.f32 %v2247_v30, %v1266_v28  ;;  %v1459_v33 = vadd.f32 %v2979_v51, %v1458_v47 }
 0x363   : > { %v1356_v20 = vpack.c.bf16 %v1338_v32, %v1337_v31  ;;  %v1557_v35 = vadd.f32 %v1525_v3, %v1459_v33  ;;  %v446_v3 = vld [vmem:[%s2735_s12 + $0x48] sm:$0xff]  }
 0x364   : > { %v1534_v30 = vunpack.c.l.bf16 %v446_v3  ;;  %v1535_v32 = vunpack.c.h.bf16 %v446_v3 }
 0x365   : > { %1589 = vst [vmem:[%s2983_s22 + $0x48] sm:$0xff] %v1557_v35  ;;  %1500 = vmatmul.bf16.gmra.mxu3 %v1356_v20  ;;  %v2253_v5 = vpop.eup %2252 }
 0x366   : > { %v1109_v15 = vpop.xlane.xlu0 %1108 }
 0x367   : > { %2254 = vrcp.f32 %v1109_v15 }
 0x368   : > { %v1269_v40 = vpop.f32.mrf.mxu2  ;;  %v1461_v41 = vpop.f32.mrf.mxu3 }
 0x369   : > { %v1462_v42 = vadd.f32 %v2979_v51, %v1461_v41  ;;  %v1339_v48 = vmul.f32 %v2249_v10, %v1269_v40  ;;  %v1537_v41 = vunpack.c.h.bf16 %v448_v36 }
 0x36b   : > { %v1558_v45 = vadd.f32 %v1526_v39, %v1462_v42 }
 0x36d   : > { %1590 = vst [vmem:[%s2983_s22 + $0x50] sm:$0xff] %v1558_v45  ;;  %v2255_v61 = vpop.eup %2254 }
 0x370   : > { %v1271_v27 = vpop.f32.mrf.mxu2  ;;  %v1463_v46 = vpop.f32.mrf.mxu3 }
 0x371   : > { %v1340_v49 = vmul.f32 %v2251_v56, %v1271_v27  ;;  %v1464_v19 = vadd.f32 %v2979_v51, %v1463_v46 }
 0x373   : > { %v1357_v50 = vpack.c.bf16 %v1340_v49, %v1339_v48  ;;  %v1559_v0 = vadd.f32 %v1527_v25, %v1464_v19  ;;  %v450_v25 = vld [vmem:[%s2735_s12 + $0x58] sm:$0xff]  }
 0x374   : > { %v1538_v56 = vunpack.c.l.bf16 %v450_v25  ;;  %v1539_v49 = vunpack.c.h.bf16 %v450_v25 }
 0x375   : > { %1591 = vst [vmem:[%s2983_s22 + $0x58] sm:$0xff] %v1559_v0  ;;  %1505 = vmatmul.bf16.gmra.mxu3 %v1357_v50 }
 0x378   : > { %v1274_v54 = vpop.f32.mrf.mxu2  ;;  %v1466_v57 = vpop.f32.mrf.mxu3 }
 0x379   : > { %v1467_v55 = vadd.f32 %v2979_v51, %v1466_v57  ;;  %v1341_v62 = vmul.f32 %v2253_v5, %v1274_v54  ;;  %v1541_v57 = vunpack.c.h.bf16 %v452_v26 }
 0x37b   : > { %v1560_v58 = vadd.f32 %v1528_v52, %v1467_v55 }
 0x37d   : > { %1592 = vst [vmem:[%s2983_s22 + $0x60] sm:$0xff] %v1560_v58 }
 0x380   : > { %v1276_v29 = vpop.f32.mrf.mxu2  ;;  %v1468_v44 = vpop.f32.mrf.mxu3 }
 0x381   : > { %v1342_v63 = vmul.f32 %v2255_v61, %v1276_v29  ;;  %v1469_v1 = vadd.f32 %v2979_v51, %v1468_v44 }
 0x383   : > { %v1358_v60 = vpack.c.bf16 %v1342_v63, %v1341_v62  ;;  %v1561_v2 = vadd.f32 %v1529_v59, %v1469_v1  ;;  %v454_v59 = vld [vmem:[%s2735_s12 + $0x68] sm:$0xff]   ;;  %s1613_s12 = scalar_lea.sflag [#allocation4], %s2731_s23 }
 0x384   : > { %v1542_v61 = vunpack.c.l.bf16 %v454_v59  ;;  %v1543_v63 = vunpack.c.h.bf16 %v454_v59 }
 0x385   : > { %1593 = vst [vmem:[%s2983_s22 + $0x68] sm:$0xff] %v1561_v2  ;;  %1510 = vmatmul.bf16.gmra.mxu3 %v1358_v60 }
 0x388   : > { %v1471_v6 = vpop.f32.mrf.mxu3 }
 0x389   : > { %v1472_v7 = vadd.f32 %v2979_v51, %v1471_v6 }
 0x38b   : > { %v1562_v8 = vadd.f32 %v1530_v34, %v1472_v7  ;;  %v1544_v34 = vunpack.c.l.bf16 %v456_v14 }
 0x38d   : > { %1594 = vst [vmem:[%s2983_s22 + $0x70] sm:$0xff] %v1562_v8 }
 0x390   : > { %v1473_v11 = vpop.f32.mrf.mxu3 }
 0x391   : > { %v1474_v38 = vadd.f32 %v2979_v51, %v1473_v11 }
 0x393   : > { %v1563_v12 = vadd.f32 %v1531_v4, %v1474_v38  ;;  %v1545_v4 = vunpack.c.h.bf16 %v456_v14 }
 0x395   : > { %1595 = vst [vmem:[%s2983_s22 + $0x78] sm:$0xff] %v1563_v12 }
 0x398   : > { %v1476_v24 = vpop.f32.mrf.mxu3 }
 0x399   : > { %v1477_v17 = vadd.f32 %v2979_v51, %v1476_v24 }
 0x39b   : > { %v1564_v18 = vadd.f32 %v1532_v16, %v1477_v17  ;;  %v1546_v16 = vunpack.c.l.bf16 %v458_v13 }
 0x39d   : > { %1596 = vst [vmem:[%s2983_s22 + $0x80] sm:$0xff] %v1564_v18 }
 0x3a0   : > { %v1478_v22 = vpop.f32.mrf.mxu3 }
 0x3a1   : > { %v1479_v23 = vadd.f32 %v2979_v51, %v1478_v22 }
 0x3a3   : > { %v1565_v9 = vadd.f32 %v1533_v43, %v1479_v23  ;;  %v1547_v43 = vunpack.c.h.bf16 %v458_v13 }
 0x3a5   : > { %1597 = vst [vmem:[%s2983_s22 + $0x88] sm:$0xff] %v1565_v9 }
 0x3a8   : > { %v1481_v28 = vpop.f32.mrf.mxu3 }
 0x3a9   : > { %v1482_v47 = vadd.f32 %v2979_v51, %v1481_v28 }
 0x3ab   : > { %v1566_v31 = vadd.f32 %v1534_v30, %v1482_v47 }
 0x3ad   : > { %1598 = vst [vmem:[%s2983_s22 + $0x90] sm:$0xff] %v1566_v31 }
 0x3b0   : > { %v1483_v33 = vpop.f32.mrf.mxu3 }
 0x3b1   : > { %v1484_v20 = vadd.f32 %v2979_v51, %v1483_v33 }
 0x3b3   : > { %v1567_v35 = vadd.f32 %v1535_v32, %v1484_v20 }
 0x3b5   : > { %1599 = vst [vmem:[%s2983_s22 + $0x98] sm:$0xff] %v1567_v35 }
 0x3b8   : > { %v1486_v21 = vpop.f32.mrf.mxu3 }
 0x3b9   : > { %v1487_v39 = vadd.f32 %v2979_v51, %v1486_v21 }
 0x3bb   : > { %v1568_v40 = vadd.f32 %v1536_v53, %v1487_v39 }
 0x3bd   : > { %1600 = vst [vmem:[%s2983_s22 + $0xa0] sm:$0xff] %v1568_v40 }
 0x3c0   : > { %v1488_v42 = vpop.f32.mrf.mxu3 }
 0x3c1   : > { %v1489_v45 = vadd.f32 %v2979_v51, %v1488_v42 }
 0x3c3   : > { %v1569_v10 = vadd.f32 %v1537_v41, %v1489_v45 }
 0x3c5   : > { %1601 = vst [vmem:[%s2983_s22 + $0xa8] sm:$0xff] %v1569_v10 }
 0x3c8   : > { %v1491_v27 = vpop.f32.mrf.mxu3 }
 0x3c9   : > { %v1492_v46 = vadd.f32 %v2979_v51, %v1491_v27 }
 0x3cb   : > { %v1570_v48 = vadd.f32 %v1538_v56, %v1492_v46 }
 0x3cd   : > { %1602 = vst [vmem:[%s2983_s22 + $0xb0] sm:$0xff] %v1570_v48 }
 0x3d0   : > { %v1493_v19 = vpop.f32.mrf.mxu3 }
 0x3d1   : > { %v1494_v50 = vadd.f32 %v2979_v51, %v1493_v19 }
 0x3d3   : > { %v1571_v0 = vadd.f32 %v1539_v49, %v1494_v50 }
 0x3d5   : > { %1603 = vst [vmem:[%s2983_s22 + $0xb8] sm:$0xff] %v1571_v0 }
 0x3d8   : > { %v1496_v15 = vpop.f32.mrf.mxu3 }
 0x3d9   : > { %v1497_v52 = vadd.f32 %v2979_v51, %v1496_v15 }
 0x3db   : > { %v1572_v54 = vadd.f32 %v1540_v37, %v1497_v52 }
 0x3dd   : > { %1604 = vst [vmem:[%s2983_s22 + $0xc0] sm:$0xff] %v1572_v54 }
 0x3e0   : > { %v1498_v55 = vpop.f32.mrf.mxu3 }
 0x3e1   : > { %v1499_v58 = vadd.f32 %v2979_v51, %v1498_v55 }
 0x3e3   : > { %v1573_v5 = vadd.f32 %v1541_v57, %v1499_v58 }
 0x3e5   : > { %1605 = vst [vmem:[%s2983_s22 + $0xc8] sm:$0xff] %v1573_v5 }
 0x3e8   : > { %v1501_v29 = vpop.f32.mrf.mxu3 }
 0x3e9   : > { %v1502_v44 = vadd.f32 %v2979_v51, %v1501_v29 }
 0x3eb   : > { %v1574_v62 = vadd.f32 %v1542_v61, %v1502_v44 }
 0x3ed   : > { %1606 = vst [vmem:[%s2983_s22 + $0xd0] sm:$0xff] %v1574_v62 }
 0x3f0   : > { %v1503_v1 = vpop.f32.mrf.mxu3 }
 0x3f1   : > { %v1504_v60 = vadd.f32 %v2979_v51, %v1503_v1 }
 0x3f3   : > { %v1575_v2 = vadd.f32 %v1543_v63, %v1504_v60 }
 0x3f5   : > { %1607 = vst [vmem:[%s2983_s22 + $0xd8] sm:$0xff] %v1575_v2 }
 0x3f8   : > { %v1506_v6 = vpop.f32.mrf.mxu3 }
 0x3f9   : > { %v1507_v7 = vadd.f32 %v2979_v51, %v1506_v6 }
 0x3fb   : > { %v1576_v8 = vadd.f32 %v1544_v34, %v1507_v7 }
 0x3fd   : > { %1608 = vst [vmem:[%s2983_s22 + $0xe0] sm:$0xff] %v1576_v8 }
 0x400   : > { %v1508_v11 = vpop.f32.mrf.mxu3 }
 0x401   : > { %v1509_v38 = vadd.f32 %v2979_v51, %v1508_v11 }
 0x403   : > { %v1577_v12 = vadd.f32 %v1545_v4, %v1509_v38 }
 0x405   : > { %1609 = vst [vmem:[%s2983_s22 + $0xe8] sm:$0xff] %v1577_v12 }
 0x408   : > { %v1511_v24 = vpop.f32.mrf.mxu3 }
 0x409   : > { %v1512_v17 = vadd.f32 %v2979_v51, %v1511_v24 }
 0x40b   : > { %v1578_v18 = vadd.f32 %v1546_v16, %v1512_v17 }
 0x40d   : > { %1610 = vst [vmem:[%s2983_s22 + $0xf0] sm:$0xff] %v1578_v18 }
 0x410   : > { %v1513_v22 = vpop.f32.mrf.mxu3 }
 0x411   : > { %v1514_v23 = vadd.f32 %v2979_v51, %v1513_v22 }
 0x413   : > { %v1579_v9 = vadd.f32 %v1547_v43, %v1514_v23 }
 0x415   : > { %1611 = vst [vmem:[%s2983_s22 + $0xf8] sm:$0xff] %v1579_v9 }
 0x416   : > { %2433 = shalt.err (!%p2430_p0)
}
 0x417   : > { %s2512_s23 = smov 128   ;;  %s2513_s22 = smov 8  }
 0x418   : > { %2040 = dma.vmem_to_hbm [thread:$0]  (%p2708_p13), %s1628_s1, 4096, %s1630_s27, %s1613_s12, %s2512_s23, %s2512_s23, %s2513_s22  }
 0x419 PF: > { %s3140_s11 = sld [smem:[#allocation18_spill]]  ;;  %p3143_p11 = scmp.ge.s32.totalorder %s2504_s10, 2 }
 0x41a   : > { %s3141_s8 = sld [smem:[#allocation20_spill]] }
 0x41f   : > { %s1644_s26 = sand.u32 1, %s3140_s11  }
 0x420   : > { %p3142_p6 = scmp.ne.s32.totalorder %s3141_s8, 0  ;;  %s1645_s16 = scalar_lea.sflag [#allocation4], %s1644_s26 }
 0x422   : > { %p2060_p12 = pnand %p3143_p11, %p3142_p6 }
 0x424   : > { %p2061_p7 = pneg %p2060_p12 }
 0x426   : > { %2479 = dma.done.wait (%p2061_p7), %s1645_s16, 4096  }
 0x427   : > { %2481 = vsyncadd (%p2061_p7), %s1645_s16, 4294963200  ;;  %s26_s10 = sadd.s32 1, %s2504_s10   ;;  %s3144_s27 = smov %s2488_s28 }
 0x428   : > { %p23_p3 = scmp.ge.s32.totalorder %s26_s10, 4   ;;  %s3145_s28 = smov %s2492_s29 }
 0x429   : > { %s3146_s29 = smov %s2717_s14  ;;  %s3147_s30 = smov %s2500_s9 }
 0x42a   : > { %s3148_s9 = smov %s3150_s13  ;;  %25 = sbr.rel (!%p23_p3) target bundleno = 12 (0xc), region = 115 }
 0x42f   :  { %1651 = vsyncpa [#allocation3], 1 }
 0x430   :  { %1653 = vsyncpa [#allocation3 + $0x1], 1 }
 0x431   :  { %1654 = vsyncpa [#allocation6], 1 }
 0x432   :  { %1655 = vsyncpa [#allocation9], 1 }
 0x433   :  { %1656 = vsyncpa [#allocation4], 1 }
 0x434   :  { %1658 = vsyncpa [#allocation4 + $0x1], 1 }

</bundles_post_ra>
